<compile_context>
chip_gen: v6e
topology: v6e:2x2x1
jax: 0.10.0
libtpu: 0.0.40
codegen_flags: <defaults>
</compile_context>

<pallas_src>
import math

import jax
import jax.numpy as jnp
from jax import lax
from jax.experimental import pallas as pl
from jax.experimental.pallas import tpu as pltpu

# ----- synthetic encoder config (small, deterministic) -----
B, S, H = 2, 8, 32          # batch, seq, hidden
NH, HD = 2, 16              # heads, head dim
I = 64                      # FFN intermediate
VOCAB = 50
MAX_POS = 32
NUM_LAYERS = 2
EPS = 1e-12
BS = B * S
OUT_LANES = 128             # lane-dense kernel output width
MXU_DTYPE = jnp.bfloat16    # matmul operand dtype; f32 kept for VPU/EUP math


# ----------------------------- in-kernel helpers -----------------------------
def _layernorm(x, gamma, beta):
    # single-pass: E[x] and E[x^2] from one read, var = E[x^2] - mu^2
    mu = jnp.mean(x, axis=-1, keepdims=True)
    ms = jnp.mean(x * x, axis=-1, keepdims=True)
    var = ms - mu * mu
    return (x - mu) * lax.rsqrt(var + EPS) * gamma + beta


def _mm(a, w, b):
    # dense projection on the MXU; weights pre-cast to bf16 in the wrapper,
    # activations cast at the call site, accumulate in f32.
    return lax.dot_general(a.astype(w.dtype), w, (((1,), (0,)), ((), ())),
                           preferred_element_type=jnp.float32) + b


# ----------------------------- fused forward kernel -----------------------------
def fused_forward_kernel(pos_col_ref, pos_row_ref, mask_ref, wemb_ref, pemb_ref,
                         temb_ref, eg_ref, eb_ref,
                         wqkv_ref, bqkv_ref, wo_ref, bo_ref, g1_ref, b1_ref,
                         wi_ref, bi_ref, wf_ref, bf_ref, g2_ref, b2_ref,
                         pw_ref, pb_ref, out_ref):
    mask = mask_ref[...]                                       # (B, S, S) f32
    emb = wemb_ref[...]                                        # (B, S, H) f32

    # --- graph-guided node-embedding averaging (embed mix) ---
    nodes_col = (pos_col_ref[...] == 0).astype(jnp.float32)    # (B, S, 1)
    token_row = (pos_row_ref[...] >= 2).astype(jnp.float32)    # (B, 1, S)
    ntm = nodes_col * token_row * mask                         # (B, S, S)
    ntm = ntm * pl.reciprocal(jnp.sum(ntm, axis=-1, keepdims=True) + 1e-10,
                              approx=True)
    avg = jnp.einsum('bst,bth->bsh', ntm, emb,
                     preferred_element_type=jnp.float32)       # (B, S, H)
    mixed = emb * (1.0 - nodes_col) + avg * nodes_col

    # --- embeddings: word + position + token-type, then LayerNorm ---
    x = (mixed + pemb_ref[...]).reshape(BS, H) + temb_ref[...]  # (B*S, H)
    x = _layernorm(x, eg_ref[...], eb_ref[...])

    # --- additive attention bias computed in-kernel ---
    # NOTE: fully-padded query rows get a uniform softmax over the -1e4 bias
    # (same as HuggingFace); those rows are ignored downstream.
    bias = (1.0 - mask) * -10000.0                             # (B, S, S)
    scale = 1.0 / math.sqrt(HD)

    # --- encoder layers (static unroll over stacked weights) ---
    for l in range(NUM_LAYERS):
        # fused QKV: one fat matmul, slice q/k/v from the 3H-lane result
        qkv = _mm(x, wqkv_ref[l], bqkv_ref[l])                 # (BS, 3H) f32
        q3 = (qkv[:, 0:H] * scale).reshape(B, S, H)            # scale Q once
        k3 = qkv[:, H:2 * H].reshape(B, S, H)
        v3 = qkv[:, 2 * H:3 * H].reshape(B, S, H)

        # per-head attention (NH=2, static loop), contexts concatenated once
        ctx_heads = []
        for h in range(NH):
            sl = slice(h * HD, (h + 1) * HD)
            qh = q3[:, :, sl].astype(MXU_DTYPE)
            kh = k3[:, :, sl].astype(MXU_DTYPE)
            vh = v3[:, :, sl].astype(MXU_DTYPE)
            scores = jnp.einsum('bqd,bkd->bqk', qh, kh,
                                preferred_element_type=jnp.float32) + bias
            p = jnp.exp(scores - jnp.max(scores, axis=-1, keepdims=True))
            p = p * pl.reciprocal(jnp.sum(p, axis=-1, keepdims=True), approx=True)
            ctx_heads.append(jnp.einsum('bqk,bkd->bqd', p.astype(MXU_DTYPE), vh,
                                        preferred_element_type=jnp.float32))
        ctx = jnp.concatenate(ctx_heads, axis=-1).reshape(BS, H)

        # ONE output projection for all heads
        attn_out = _mm(ctx, wo_ref[l], bo_ref[l])

        h1 = _layernorm(x + attn_out, g1_ref[l], b1_ref[l])
        # TODO(synk): HF 'gelu' is the exact erf form; tanh approximation used here.
        inter = jax.nn.gelu(_mm(h1, wi_ref[l], bi_ref[l]), approximate=True)
        ffn = _mm(inter, wf_ref[l], bf_ref[l])
        x = _layernorm(h1 + ffn, g2_ref[l], b2_ref[l])

    # --- pooler, lane-dense output ---
    # Dense over ALL positions against the lane-padded (H, 128) pooler weight ->
    # the kernel output is a fully dense (BS, 128) tile (unmasked stores). The
    # wrapper extracts the [CLS] rows (s == 0) and the first H lanes.
    out_ref[...] = jnp.tanh(_mm(x, pw_ref[...], pb_ref[...]))


# ----------------------------- wrapper -----------------------------
@jax.jit
def model_forward(code_inputs, attn_mask, position_idx, params):
    attn_f = attn_mask.astype(jnp.float32)
    # embedding lookups = data-dependent gathers -> plain JAX glue outside the kernel
    word_emb = jnp.take(params["word_emb"], code_inputs, axis=0)    # (B, S, H)
    pos_emb = jnp.take(params["pos_emb"], position_idx, axis=0)     # (B, S, H)
    pos_col = position_idx.reshape(B, S, 1)
    pos_row = position_idx.reshape(B, 1, S)

    layers = params["layers"]
    stk = lambda name: jnp.stack([lyr[name] for lyr in layers], axis=0)

    # fused QKV weight / bias, stacked over layers; dense weights staged in bf16
    wqkv = jnp.concatenate([stk("wq"), stk("wk"), stk("wv")], axis=-1).astype(MXU_DTYPE)
    bqkv = jnp.concatenate([stk("bq"), stk("bk"), stk("bv")], axis=-1)
    wo, bo = stk("wo").astype(MXU_DTYPE), stk("bo")
    wi, bi = stk("wi").astype(MXU_DTYPE), stk("bi")
    wf, bf = stk("wf").astype(MXU_DTYPE), stk("bf")
    g1, b1, g2, b2 = stk("g1"), stk("b1"), stk("g2"), stk("b2")

    # lane-pad the pooler weight/bias so the kernel output is a dense 128-lane slab
    pw = jnp.pad(params["pool_w"], ((0, 0), (0, OUT_LANES - H))).astype(MXU_DTYPE)
    pb = jnp.pad(params["pool_b"], ((0, 0), (0, OUT_LANES - H)))

    operands = (pos_col, pos_row, attn_f, word_emb, pos_emb,
                params["type_emb"], params["emb_gamma"], params["emb_beta"],
                wqkv, bqkv, wo, bo, g1, b1, wi, bi, wf, bf, g2, b2, pw, pb)

    # advisory cost estimate for the XLA scheduler
    flops = NUM_LAYERS * (2 * BS * H * (3 * H + H + I) + 2 * BS * I * H
                          + 4 * B * NH * S * S * HD) + 2 * BS * H * OUT_LANES
    transcendentals = NUM_LAYERS * (B * NH * S * S + BS * I) + BS * OUT_LANES
    bytes_accessed = sum(int(o.size) * o.dtype.itemsize for o in operands) \
        + BS * OUT_LANES * 4

    # Single fused grid-less pallas_call: every operand is a full-array VMEM block
    # (total footprint << 1 MiB), all compute happens in one kernel invocation.
    pooled_all = pl.pallas_call(
        fused_forward_kernel,
        out_shape=jax.ShapeDtypeStruct((BS, OUT_LANES), jnp.float32),
        compiler_params=pltpu.CompilerParams(vmem_limit_bytes=16 * 1024 * 1024),
        cost_estimate=pl.CostEstimate(flops=flops,
                                      transcendentals=transcendentals,
                                      bytes_accessed=bytes_accessed),
    )(*operands)

    return pooled_all.reshape(B, S, OUT_LANES)[:, 0, :H]        # (B, H) pooled [CLS]


# ----------------------------- deterministic parameter init -----------------------------
def init_params(key):
    keys = iter(jax.random.split(key, 64))

    def w(shape, scale=0.02):
        return (scale * jax.random.normal(next(keys), shape)).astype(jnp.float32)

    ones = lambda shp: jnp.ones(shp, jnp.float32)
    zeros = lambda shp: jnp.zeros(shp, jnp.float32)
    params = {
        "word_emb": w((VOCAB, H)),
        "pos_emb": w((MAX_POS, H)),
        "type_emb": w((1, H)),
        "emb_gamma": ones((1, H)), "emb_beta": zeros((1, H)),
        "pool_w": w((H, H)), "pool_b": zeros((1, H)),
        "layers": [],
    }
    for _ in range(NUM_LAYERS):
        params["layers"].append({
            "wq": w((H, H)), "bq": zeros((1, H)),
            "wk": w((H, H)), "bk": zeros((1, H)),
            "wv": w((H, H)), "bv": zeros((1, H)),
            "wo": w((H, H)), "bo": zeros((1, H)),
            "g1": ones((1, H)), "b1": zeros((1, H)),
            "wi": w((H, I)), "bi": zeros((1, I)),
            "wf": w((I, H)), "bf": zeros((1, H)),
            "g2": ones((1, H)), "b2": zeros((1, H)),
        })
    return params


if __name__ == "__main__":
    key = jax.random.PRNGKey(0)
    pkey, ikey = jax.random.split(key)
    params = init_params(pkey)

    # GraphCodeBERT position layout: code tokens >= 2, DFG nodes = 0, padding = 1
    position_idx = jnp.array([[2, 3, 4, 5, 6, 0, 0, 1],
                              [2, 3, 4, 5, 0, 0, 1, 1]], dtype=jnp.int32)
    code_inputs = jax.random.randint(ikey, (B, S), 0, VOCAB, dtype=jnp.int32)
    valid = position_idx != 1
    attn_mask = (valid[:, :, None] & valid[:, None, :]).astype(jnp.float32)

    out = model_forward(code_inputs, attn_mask, position_idx, params)
    out = jax.block_until_ready(out)
    assert out.shape == (B, H) and out.dtype == jnp.float32
    assert bool(jnp.all(jnp.isfinite(out)))
    # TODO(synk): dropout omitted (eval-mode semantics); nl_inputs branch not exercised.
    print("KERNEL_OK")
</pallas_src>

<mosaic_0001>
module attributes {stable_mosaic.version = 11 : i64} {
  func.func @fused_forward_kernel(%arg0: memref<2x8x1xi32, #tpu.memory_space<vmem>>, %arg1: memref<2x1x8xi32, #tpu.memory_space<vmem>>, %arg2: memref<2x8x8xf32, #tpu.memory_space<vmem>>, %arg3: memref<2x8x32xf32, #tpu.memory_space<vmem>>, %arg4: memref<2x8x32xf32, #tpu.memory_space<vmem>>, %arg5: memref<1x32xf32, #tpu.memory_space<vmem>>, %arg6: memref<1x32xf32, #tpu.memory_space<vmem>>, %arg7: memref<1x32xf32, #tpu.memory_space<vmem>>, %arg8: memref<2x32x96xbf16, #tpu.memory_space<vmem>>, %arg9: memref<2x1x96xf32, #tpu.memory_space<vmem>>, %arg10: memref<2x32x32xbf16, #tpu.memory_space<vmem>>, %arg11: memref<2x1x32xf32, #tpu.memory_space<vmem>>, %arg12: memref<2x1x32xf32, #tpu.memory_space<vmem>>, %arg13: memref<2x1x32xf32, #tpu.memory_space<vmem>>, %arg14: memref<2x32x64xbf16, #tpu.memory_space<vmem>>, %arg15: memref<2x1x64xf32, #tpu.memory_space<vmem>>, %arg16: memref<2x64x32xbf16, #tpu.memory_space<vmem>>, %arg17: memref<2x1x32xf32, #tpu.memory_space<vmem>>, %arg18: memref<2x1x32xf32, #tpu.memory_space<vmem>>, %arg19: memref<2x1x32xf32, #tpu.memory_space<vmem>>, %arg20: memref<32x128xbf16, #tpu.memory_space<vmem>>, %arg21: memref<1x128xf32, #tpu.memory_space<vmem>>, %arg22: memref<16x128xf32, #tpu.memory_space<vmem>>) attributes {dimension_semantics = [], scalar_prefetch = 0 : i64, scratch_operands = 0 : i64, tpu.core_type = #tpu.core_type<tc>} {
    %c0 = arith.constant 0 : index
    %c0_0 = arith.constant 0 : index
    %c0_1 = arith.constant 0 : index
    %0 = vector.load %arg2[%c0, %c0_0, %c0_1] : memref<2x8x8xf32, #tpu.memory_space<vmem>>, vector<2x8x8xf32>
    %c0_2 = arith.constant 0 : index
    %c0_3 = arith.constant 0 : index
    %c0_4 = arith.constant 0 : index
    %1 = vector.load %arg3[%c0_2, %c0_3, %c0_4] : memref<2x8x32xf32, #tpu.memory_space<vmem>>, vector<2x8x32xf32>
    %c0_5 = arith.constant 0 : index
    %c0_6 = arith.constant 0 : index
    %c0_7 = arith.constant 0 : index
    %2 = vector.load %arg0[%c0_5, %c0_6, %c0_7] : memref<2x8x1xi32, #tpu.memory_space<vmem>>, vector<2x8x1xi32>
    %c0_i32 = arith.constant 0 : i32
    %3 = vector.broadcast %c0_i32 : i32 to vector<2x8x1xi32>
    %4 = arith.cmpi eq, %2, %3 : vector<2x8x1xi32>
    %5 = arith.extui %4 : vector<2x8x1xi1> to vector<2x8x1xi32>
    %6 = arith.sitofp %5 : vector<2x8x1xi32> to vector<2x8x1xf32>
    %c0_8 = arith.constant 0 : index
    %c0_9 = arith.constant 0 : index
    %c0_10 = arith.constant 0 : index
    %7 = vector.load %arg1[%c0_8, %c0_9, %c0_10] : memref<2x1x8xi32, #tpu.memory_space<vmem>>, vector<2x1x8xi32>
    %c2_i32 = arith.constant 2 : i32
    %8 = vector.broadcast %c2_i32 : i32 to vector<2x1x8xi32>
    %9 = arith.cmpi sge, %7, %8 : vector<2x1x8xi32>
    %10 = arith.extui %9 : vector<2x1x8xi1> to vector<2x1x8xi32>
    %11 = arith.sitofp %10 : vector<2x1x8xi32> to vector<2x1x8xf32>
    %12 = vector.broadcast %6 : vector<2x8x1xf32> to vector<2x8x8xf32>
    %13 = vector.broadcast %11 : vector<2x1x8xf32> to vector<2x8x8xf32>
    %14 = arith.mulf %12, %13 : vector<2x8x8xf32>
    %15 = arith.mulf %14, %0 : vector<2x8x8xf32>
    %cst = arith.constant dense<0.000000e+00> : vector<2x8xf32>
    %16 = vector.multi_reduction <add>, %15, %cst [2] : vector<2x8x8xf32> to vector<2x8xf32>
    %17 = vector.shape_cast %16 : vector<2x8xf32> to vector<2x8x1xf32>
    %cst_11 = arith.constant 1.000000e-10 : f32
    %18 = vector.broadcast %cst_11 : f32 to vector<2x8x1xf32>
    %19 = arith.addf %17, %18 : vector<2x8x1xf32>
    %20 = tpu.reciprocal %19 {approx = true} : vector<2x8x1xf32> -> vector<2x8x1xf32>
    %21 = vector.broadcast %20 : vector<2x8x1xf32> to vector<2x8x8xf32>
    %22 = arith.mulf %15, %21 : vector<2x8x8xf32>
    "tpu.trace_start"() <{level = 10 : i32, message = "bst,bth->bsh"}> : () -> ()
    %cst_12 = arith.constant dense<0.000000e+00> : vector<2x8x32xf32>
    %23 = tpu.matmul %22, %1, %cst_12 {dimension_numbers = #tpu.dot_dimension_numbers<[2], [1], [1], [2], [0, 0, 0, 1, 1, 2], [0], [0]>} : vector<2x8x8xf32>, vector<2x8x32xf32>, vector<2x8x32xf32> -> vector<2x8x32xf32>
    "tpu.trace_stop"() : () -> ()
    %cst_13 = arith.constant 1.000000e+00 : f32
    %24 = vector.broadcast %cst_13 : f32 to vector<2x8x1xf32>
    %25 = arith.subf %24, %6 : vector<2x8x1xf32>
    %26 = vector.broadcast %25 : vector<2x8x1xf32> to vector<2x8x32xf32>
    %27 = arith.mulf %1, %26 : vector<2x8x32xf32>
    %28 = vector.broadcast %6 : vector<2x8x1xf32> to vector<2x8x32xf32>
    %29 = arith.mulf %23, %28 : vector<2x8x32xf32>
    %30 = arith.addf %27, %29 : vector<2x8x32xf32>
    %c0_14 = arith.constant 0 : index
    %c0_15 = arith.constant 0 : index
    %c0_16 = arith.constant 0 : index
    %31 = vector.load %arg4[%c0_14, %c0_15, %c0_16] : memref<2x8x32xf32, #tpu.memory_space<vmem>>, vector<2x8x32xf32>
    %32 = arith.addf %30, %31 : vector<2x8x32xf32>
    %33 = vector.shape_cast %32 : vector<2x8x32xf32> to vector<16x32xf32>
    %c0_17 = arith.constant 0 : index
    %c0_18 = arith.constant 0 : index
    %34 = vector.load %arg5[%c0_17, %c0_18] : memref<1x32xf32, #tpu.memory_space<vmem>>, vector<1x32xf32>
    %35 = vector.broadcast %34 : vector<1x32xf32> to vector<16x32xf32>
    %36 = arith.addf %33, %35 : vector<16x32xf32>
    %c0_19 = arith.constant 0 : index
    %c0_20 = arith.constant 0 : index
    %37 = vector.load %arg6[%c0_19, %c0_20] : memref<1x32xf32, #tpu.memory_space<vmem>>, vector<1x32xf32>
    %c0_21 = arith.constant 0 : index
    %c0_22 = arith.constant 0 : index
    %38 = vector.load %arg7[%c0_21, %c0_22] : memref<1x32xf32, #tpu.memory_space<vmem>>, vector<1x32xf32>
    %cst_23 = arith.constant dense<0.000000e+00> : vector<16xf32>
    %39 = vector.multi_reduction <add>, %36, %cst_23 [1] : vector<16x32xf32> to vector<16xf32>
    %40 = vector.shape_cast %39 : vector<16xf32> to vector<16x1xf32>
    %cst_24 = arith.constant 3.200000e+01 : f32
    %41 = vector.broadcast %cst_24 : f32 to vector<16x1xf32>
    %42 = arith.divf %40, %41 : vector<16x1xf32>
    %43 = arith.mulf %36, %36 : vector<16x32xf32>
    %cst_25 = arith.constant dense<0.000000e+00> : vector<16xf32>
    %44 = vector.multi_reduction <add>, %43, %cst_25 [1] : vector<16x32xf32> to vector<16xf32>
    %45 = vector.shape_cast %44 : vector<16xf32> to vector<16x1xf32>
    %cst_26 = arith.constant 3.200000e+01 : f32
    %46 = vector.broadcast %cst_26 : f32 to vector<16x1xf32>
    %47 = arith.divf %45, %46 : vector<16x1xf32>
    %48 = arith.mulf %42, %42 : vector<16x1xf32>
    %49 = arith.subf %47, %48 : vector<16x1xf32>
    %50 = vector.broadcast %42 : vector<16x1xf32> to vector<16x32xf32>
    %51 = arith.subf %36, %50 : vector<16x32xf32>
    %cst_27 = arith.constant 9.99999996E-13 : f32
    %52 = vector.broadcast %cst_27 : f32 to vector<16x1xf32>
    %53 = arith.addf %49, %52 : vector<16x1xf32>
    %54 = math.rsqrt %53 : vector<16x1xf32>
    %55 = vector.broadcast %54 : vector<16x1xf32> to vector<16x32xf32>
    %56 = arith.mulf %51, %55 : vector<16x32xf32>
    %57 = vector.broadcast %37 : vector<1x32xf32> to vector<16x32xf32>
    %58 = arith.mulf %56, %57 : vector<16x32xf32>
    %59 = vector.broadcast %38 : vector<1x32xf32> to vector<16x32xf32>
    %60 = arith.addf %58, %59 : vector<16x32xf32>
    %cst_28 = arith.constant 1.000000e+00 : f32
    %61 = vector.broadcast %cst_28 : f32 to vector<2x8x8xf32>
    %62 = arith.subf %61, %0 : vector<2x8x8xf32>
    %cst_29 = arith.constant -1.000000e+04 : f32
    %63 = vector.broadcast %cst_29 : f32 to vector<2x8x8xf32>
    %64 = arith.mulf %62, %63 : vector<2x8x8xf32>
    %c0_30 = arith.constant 0 : index
    %c0_31 = arith.constant 0 : index
    %c0_32 = arith.constant 0 : index
    %65 = vector.load %arg8[%c0_30, %c0_31, %c0_32] : memref<2x32x96xbf16, #tpu.memory_space<vmem>>, vector<1x32x96xbf16>
    %66 = vector.shape_cast %65 : vector<1x32x96xbf16> to vector<32x96xbf16>
    %c0_33 = arith.constant 0 : index
    %c0_34 = arith.constant 0 : index
    %c0_35 = arith.constant 0 : index
    %67 = vector.load %arg9[%c0_33, %c0_34, %c0_35] : memref<2x1x96xf32, #tpu.memory_space<vmem>>, vector<1x1x96xf32>
    %68 = vector.shape_cast %67 : vector<1x1x96xf32> to vector<1x96xf32>
    %69 = arith.truncf %60 : vector<16x32xf32> to vector<16x32xbf16>
    %cst_36 = arith.constant dense<0.000000e+00> : vector<16x96xf32>
    %70 = tpu.matmul %69, %66, %cst_36 {dimension_numbers = #tpu.dot_dimension_numbers<[1], [0], [0], [1], [0, 0, 1, 1], [], []>} : vector<16x32xbf16>, vector<32x96xbf16>, vector<16x96xf32> -> vector<16x96xf32>
    %71 = vector.broadcast %68 : vector<1x96xf32> to vector<16x96xf32>
    %72 = arith.addf %70, %71 : vector<16x96xf32>
    %73 = vector.extract_strided_slice %72 {offsets = [0, 0], sizes = [16, 32], strides = [1, 1]} : vector<16x96xf32> to vector<16x32xf32>
    %cst_37 = arith.constant 2.500000e-01 : f32
    %74 = vector.broadcast %cst_37 : f32 to vector<16x32xf32>
    %75 = arith.mulf %73, %74 : vector<16x32xf32>
    %76 = vector.shape_cast %75 : vector<16x32xf32> to vector<2x8x32xf32>
    %77 = vector.extract_strided_slice %72 {offsets = [0, 32], sizes = [16, 32], strides = [1, 1]} : vector<16x96xf32> to vector<16x32xf32>
    %78 = vector.shape_cast %77 : vector<16x32xf32> to vector<2x8x32xf32>
    %79 = vector.extract_strided_slice %72 {offsets = [0, 64], sizes = [16, 32], strides = [1, 1]} : vector<16x96xf32> to vector<16x32xf32>
    %80 = vector.shape_cast %79 : vector<16x32xf32> to vector<2x8x32xf32>
    %81 = vector.extract_strided_slice %76 {offsets = [0, 0, 0], sizes = [2, 8, 16], strides = [1, 1, 1]} : vector<2x8x32xf32> to vector<2x8x16xf32>
    %82 = arith.truncf %81 : vector<2x8x16xf32> to vector<2x8x16xbf16>
    %83 = vector.extract_strided_slice %78 {offsets = [0, 0, 0], sizes = [2, 8, 16], strides = [1, 1, 1]} : vector<2x8x32xf32> to vector<2x8x16xf32>
    %84 = arith.truncf %83 : vector<2x8x16xf32> to vector<2x8x16xbf16>
    %85 = vector.extract_strided_slice %80 {offsets = [0, 0, 0], sizes = [2, 8, 16], strides = [1, 1, 1]} : vector<2x8x32xf32> to vector<2x8x16xf32>
    %86 = arith.truncf %85 : vector<2x8x16xf32> to vector<2x8x16xbf16>
    "tpu.trace_start"() <{level = 10 : i32, message = "bqd,bkd->bqk"}> : () -> ()
    %cst_38 = arith.constant dense<0.000000e+00> : vector<2x8x8xf32>
    %87 = tpu.matmul %82, %84, %cst_38 {dimension_numbers = #tpu.dot_dimension_numbers<[2], [2], [1], [1], [0, 0, 0, 1, 1, 1], [0], [0]>} : vector<2x8x16xbf16>, vector<2x8x16xbf16>, vector<2x8x8xf32> -> vector<2x8x8xf32>
    "tpu.trace_stop"() : () -> ()
    %88 = arith.addf %87, %64 : vector<2x8x8xf32>
    %cst_39 = arith.constant dense<0xFF800000> : vector<2x8xf32>
    %89 = vector.multi_reduction <maximumf>, %88, %cst_39 [2] : vector<2x8x8xf32> to vector<2x8xf32>
    %90 = vector.shape_cast %89 : vector<2x8xf32> to vector<2x8x1xf32>
    %91 = vector.broadcast %90 : vector<2x8x1xf32> to vector<2x8x8xf32>
    %92 = arith.subf %88, %91 : vector<2x8x8xf32>
    %93 = math.exp %92 : vector<2x8x8xf32>
    %cst_40 = arith.constant dense<0.000000e+00> : vector<2x8xf32>
    %94 = vector.multi_reduction <add>, %93, %cst_40 [2] : vector<2x8x8xf32> to vector<2x8xf32>
    %95 = vector.shape_cast %94 : vector<2x8xf32> to vector<2x8x1xf32>
    %96 = tpu.reciprocal %95 {approx = true} : vector<2x8x1xf32> -> vector<2x8x1xf32>
    %97 = vector.broadcast %96 : vector<2x8x1xf32> to vector<2x8x8xf32>
    %98 = arith.mulf %93, %97 : vector<2x8x8xf32>
    %99 = arith.truncf %98 : vector<2x8x8xf32> to vector<2x8x8xbf16>
    "tpu.trace_start"() <{level = 10 : i32, message = "bqk,bkd->bqd"}> : () -> ()
    %cst_41 = arith.constant dense<0.000000e+00> : vector<2x8x16xf32>
    %100 = tpu.matmul %99, %86, %cst_41 {dimension_numbers = #tpu.dot_dimension_numbers<[2], [1], [1], [2], [0, 0, 0, 1, 1, 2], [0], [0]>} : vector<2x8x8xbf16>, vector<2x8x16xbf16>, vector<2x8x16xf32> -> vector<2x8x16xf32>
    "tpu.trace_stop"() : () -> ()
    %101 = vector.extract_strided_slice %76 {offsets = [0, 0, 16], sizes = [2, 8, 16], strides = [1, 1, 1]} : vector<2x8x32xf32> to vector<2x8x16xf32>
    %102 = arith.truncf %101 : vector<2x8x16xf32> to vector<2x8x16xbf16>
    %103 = vector.extract_strided_slice %78 {offsets = [0, 0, 16], sizes = [2, 8, 16], strides = [1, 1, 1]} : vector<2x8x32xf32> to vector<2x8x16xf32>
    %104 = arith.truncf %103 : vector<2x8x16xf32> to vector<2x8x16xbf16>
    %105 = vector.extract_strided_slice %80 {offsets = [0, 0, 16], sizes = [2, 8, 16], strides = [1, 1, 1]} : vector<2x8x32xf32> to vector<2x8x16xf32>
    %106 = arith.truncf %105 : vector<2x8x16xf32> to vector<2x8x16xbf16>
    "tpu.trace_start"() <{level = 10 : i32, message = "bqd,bkd->bqk"}> : () -> ()
    %cst_42 = arith.constant dense<0.000000e+00> : vector<2x8x8xf32>
    %107 = tpu.matmul %102, %104, %cst_42 {dimension_numbers = #tpu.dot_dimension_numbers<[2], [2], [1], [1], [0, 0, 0, 1, 1, 1], [0], [0]>} : vector<2x8x16xbf16>, vector<2x8x16xbf16>, vector<2x8x8xf32> -> vector<2x8x8xf32>
    "tpu.trace_stop"() : () -> ()
    %108 = arith.addf %107, %64 : vector<2x8x8xf32>
    %cst_43 = arith.constant dense<0xFF800000> : vector<2x8xf32>
    %109 = vector.multi_reduction <maximumf>, %108, %cst_43 [2] : vector<2x8x8xf32> to vector<2x8xf32>
    %110 = vector.shape_cast %109 : vector<2x8xf32> to vector<2x8x1xf32>
    %111 = vector.broadcast %110 : vector<2x8x1xf32> to vector<2x8x8xf32>
    %112 = arith.subf %108, %111 : vector<2x8x8xf32>
    %113 = math.exp %112 : vector<2x8x8xf32>
    %cst_44 = arith.constant dense<0.000000e+00> : vector<2x8xf32>
    %114 = vector.multi_reduction <add>, %113, %cst_44 [2] : vector<2x8x8xf32> to vector<2x8xf32>
    %115 = vector.shape_cast %114 : vector<2x8xf32> to vector<2x8x1xf32>
    %116 = tpu.reciprocal %115 {approx = true} : vector<2x8x1xf32> -> vector<2x8x1xf32>
    %117 = vector.broadcast %116 : vector<2x8x1xf32> to vector<2x8x8xf32>
    %118 = arith.mulf %113, %117 : vector<2x8x8xf32>
    %119 = arith.truncf %118 : vector<2x8x8xf32> to vector<2x8x8xbf16>
    "tpu.trace_start"() <{level = 10 : i32, message = "bqk,bkd->bqd"}> : () -> ()
    %cst_45 = arith.constant dense<0.000000e+00> : vector<2x8x16xf32>
    %120 = tpu.matmul %119, %106, %cst_45 {dimension_numbers = #tpu.dot_dimension_numbers<[2], [1], [1], [2], [0, 0, 0, 1, 1, 2], [0], [0]>} : vector<2x8x8xbf16>, vector<2x8x16xbf16>, vector<2x8x16xf32> -> vector<2x8x16xf32>
    "tpu.trace_stop"() : () -> ()
    %121 = tpu.concatenate %100, %120 in 2 : vector<2x8x16xf32>, vector<2x8x16xf32> -> vector<2x8x32xf32>
    %122 = vector.shape_cast %121 : vector<2x8x32xf32> to vector<16x32xf32>
    %c0_46 = arith.constant 0 : index
    %c0_47 = arith.constant 0 : index
    %c0_48 = arith.constant 0 : index
    %123 = vector.load %arg10[%c0_46, %c0_47, %c0_48] : memref<2x32x32xbf16, #tpu.memory_space<vmem>>, vector<1x32x32xbf16>
    %124 = vector.shape_cast %123 : vector<1x32x32xbf16> to vector<32x32xbf16>
    %c0_49 = arith.constant 0 : index
    %c0_50 = arith.constant 0 : index
    %c0_51 = arith.constant 0 : index
    %125 = vector.load %arg11[%c0_49, %c0_50, %c0_51] : memref<2x1x32xf32, #tpu.memory_space<vmem>>, vector<1x1x32xf32>
    %126 = vector.shape_cast %125 : vector<1x1x32xf32> to vector<1x32xf32>
    %127 = arith.truncf %122 : vector<16x32xf32> to vector<16x32xbf16>
    %cst_52 = arith.constant dense<0.000000e+00> : vector<16x32xf32>
    %128 = tpu.matmul %127, %124, %cst_52 {dimension_numbers = #tpu.dot_dimension_numbers<[1], [0], [0], [1], [0, 0, 1, 1], [], []>} : vector<16x32xbf16>, vector<32x32xbf16>, vector<16x32xf32> -> vector<16x32xf32>
    %129 = vector.broadcast %126 : vector<1x32xf32> to vector<16x32xf32>
    %130 = arith.addf %128, %129 : vector<16x32xf32>
    %131 = arith.addf %60, %130 : vector<16x32xf32>
    %c0_53 = arith.constant 0 : index
    %c0_54 = arith.constant 0 : index
    %c0_55 = arith.constant 0 : index
    %132 = vector.load %arg12[%c0_53, %c0_54, %c0_55] : memref<2x1x32xf32, #tpu.memory_space<vmem>>, vector<1x1x32xf32>
    %133 = vector.shape_cast %132 : vector<1x1x32xf32> to vector<1x32xf32>
    %c0_56 = arith.constant 0 : index
    %c0_57 = arith.constant 0 : index
    %c0_58 = arith.constant 0 : index
    %134 = vector.load %arg13[%c0_56, %c0_57, %c0_58] : memref<2x1x32xf32, #tpu.memory_space<vmem>>, vector<1x1x32xf32>
    %135 = vector.shape_cast %134 : vector<1x1x32xf32> to vector<1x32xf32>
    %cst_59 = arith.constant dense<0.000000e+00> : vector<16xf32>
    %136 = vector.multi_reduction <add>, %131, %cst_59 [1] : vector<16x32xf32> to vector<16xf32>
    %137 = vector.shape_cast %136 : vector<16xf32> to vector<16x1xf32>
    %cst_60 = arith.constant 3.200000e+01 : f32
    %138 = vector.broadcast %cst_60 : f32 to vector<16x1xf32>
    %139 = arith.divf %137, %138 : vector<16x1xf32>
    %140 = arith.mulf %131, %131 : vector<16x32xf32>
    %cst_61 = arith.constant dense<0.000000e+00> : vector<16xf32>
    %141 = vector.multi_reduction <add>, %140, %cst_61 [1] : vector<16x32xf32> to vector<16xf32>
    %142 = vector.shape_cast %141 : vector<16xf32> to vector<16x1xf32>
    %cst_62 = arith.constant 3.200000e+01 : f32
    %143 = vector.broadcast %cst_62 : f32 to vector<16x1xf32>
    %144 = arith.divf %142, %143 : vector<16x1xf32>
    %145 = arith.mulf %139, %139 : vector<16x1xf32>
    %146 = arith.subf %144, %145 : vector<16x1xf32>
    %147 = vector.broadcast %139 : vector<16x1xf32> to vector<16x32xf32>
    %148 = arith.subf %131, %147 : vector<16x32xf32>
    %cst_63 = arith.constant 9.99999996E-13 : f32
    %149 = vector.broadcast %cst_63 : f32 to vector<16x1xf32>
    %150 = arith.addf %146, %149 : vector<16x1xf32>
    %151 = math.rsqrt %150 : vector<16x1xf32>
    %152 = vector.broadcast %151 : vector<16x1xf32> to vector<16x32xf32>
    %153 = arith.mulf %148, %152 : vector<16x32xf32>
    %154 = vector.broadcast %133 : vector<1x32xf32> to vector<16x32xf32>
    %155 = arith.mulf %153, %154 : vector<16x32xf32>
    %156 = vector.broadcast %135 : vector<1x32xf32> to vector<16x32xf32>
    %157 = arith.addf %155, %156 : vector<16x32xf32>
    %c0_64 = arith.constant 0 : index
    %c0_65 = arith.constant 0 : index
    %c0_66 = arith.constant 0 : index
    %158 = vector.load %arg14[%c0_64, %c0_65, %c0_66] : memref<2x32x64xbf16, #tpu.memory_space<vmem>>, vector<1x32x64xbf16>
    %159 = vector.shape_cast %158 : vector<1x32x64xbf16> to vector<32x64xbf16>
    %c0_67 = arith.constant 0 : index
    %c0_68 = arith.constant 0 : index
    %c0_69 = arith.constant 0 : index
    %160 = vector.load %arg15[%c0_67, %c0_68, %c0_69] : memref<2x1x64xf32, #tpu.memory_space<vmem>>, vector<1x1x64xf32>
    %161 = vector.shape_cast %160 : vector<1x1x64xf32> to vector<1x64xf32>
    %162 = arith.truncf %157 : vector<16x32xf32> to vector<16x32xbf16>
    %cst_70 = arith.constant dense<0.000000e+00> : vector<16x64xf32>
    %163 = tpu.matmul %162, %159, %cst_70 {dimension_numbers = #tpu.dot_dimension_numbers<[1], [0], [0], [1], [0, 0, 1, 1], [], []>} : vector<16x32xbf16>, vector<32x64xbf16>, vector<16x64xf32> -> vector<16x64xf32>
    %164 = vector.broadcast %161 : vector<1x64xf32> to vector<16x64xf32>
    %165 = arith.addf %163, %164 : vector<16x64xf32>
    %166 = arith.mulf %165, %165 : vector<16x64xf32>
    %167 = arith.mulf %165, %166 : vector<16x64xf32>
    %cst_71 = arith.constant 4.471500e-02 : f32
    %168 = vector.broadcast %cst_71 : f32 to vector<16x64xf32>
    %169 = arith.mulf %168, %167 : vector<16x64xf32>
    %170 = arith.addf %165, %169 : vector<16x64xf32>
    %cst_72 = arith.constant 0.797884583 : f32
    %171 = vector.broadcast %cst_72 : f32 to vector<16x64xf32>
    %172 = arith.mulf %171, %170 : vector<16x64xf32>
    %173 = math.tanh %172 : vector<16x64xf32>
    %cst_73 = arith.constant 1.000000e+00 : f32
    %174 = vector.broadcast %cst_73 : f32 to vector<16x64xf32>
    %175 = arith.addf %174, %173 : vector<16x64xf32>
    %cst_74 = arith.constant 5.000000e-01 : f32
    %176 = vector.broadcast %cst_74 : f32 to vector<16x64xf32>
    %177 = arith.mulf %176, %175 : vector<16x64xf32>
    %178 = arith.mulf %165, %177 : vector<16x64xf32>
    %c0_75 = arith.constant 0 : index
    %c0_76 = arith.constant 0 : index
    %c0_77 = arith.constant 0 : index
    %179 = vector.load %arg16[%c0_75, %c0_76, %c0_77] : memref<2x64x32xbf16, #tpu.memory_space<vmem>>, vector<1x64x32xbf16>
    %180 = vector.shape_cast %179 : vector<1x64x32xbf16> to vector<64x32xbf16>
    %c0_78 = arith.constant 0 : index
    %c0_79 = arith.constant 0 : index
    %c0_80 = arith.constant 0 : index
    %181 = vector.load %arg17[%c0_78, %c0_79, %c0_80] : memref<2x1x32xf32, #tpu.memory_space<vmem>>, vector<1x1x32xf32>
    %182 = vector.shape_cast %181 : vector<1x1x32xf32> to vector<1x32xf32>
    %183 = arith.truncf %178 : vector<16x64xf32> to vector<16x64xbf16>
    %cst_81 = arith.constant dense<0.000000e+00> : vector<16x32xf32>
    %184 = tpu.matmul %183, %180, %cst_81 {dimension_numbers = #tpu.dot_dimension_numbers<[1], [0], [0], [1], [0, 0, 1, 1], [], []>} : vector<16x64xbf16>, vector<64x32xbf16>, vector<16x32xf32> -> vector<16x32xf32>
    %185 = vector.broadcast %182 : vector<1x32xf32> to vector<16x32xf32>
    %186 = arith.addf %184, %185 : vector<16x32xf32>
    %187 = arith.addf %157, %186 : vector<16x32xf32>
    %c0_82 = arith.constant 0 : index
    %c0_83 = arith.constant 0 : index
    %c0_84 = arith.constant 0 : index
    %188 = vector.load %arg18[%c0_82, %c0_83, %c0_84] : memref<2x1x32xf32, #tpu.memory_space<vmem>>, vector<1x1x32xf32>
    %189 = vector.shape_cast %188 : vector<1x1x32xf32> to vector<1x32xf32>
    %c0_85 = arith.constant 0 : index
    %c0_86 = arith.constant 0 : index
    %c0_87 = arith.constant 0 : index
    %190 = vector.load %arg19[%c0_85, %c0_86, %c0_87] : memref<2x1x32xf32, #tpu.memory_space<vmem>>, vector<1x1x32xf32>
    %191 = vector.shape_cast %190 : vector<1x1x32xf32> to vector<1x32xf32>
    %cst_88 = arith.constant dense<0.000000e+00> : vector<16xf32>
    %192 = vector.multi_reduction <add>, %187, %cst_88 [1] : vector<16x32xf32> to vector<16xf32>
    %193 = vector.shape_cast %192 : vector<16xf32> to vector<16x1xf32>
    %cst_89 = arith.constant 3.200000e+01 : f32
    %194 = vector.broadcast %cst_89 : f32 to vector<16x1xf32>
    %195 = arith.divf %193, %194 : vector<16x1xf32>
    %196 = arith.mulf %187, %187 : vector<16x32xf32>
    %cst_90 = arith.constant dense<0.000000e+00> : vector<16xf32>
    %197 = vector.multi_reduction <add>, %196, %cst_90 [1] : vector<16x32xf32> to vector<16xf32>
    %198 = vector.shape_cast %197 : vector<16xf32> to vector<16x1xf32>
    %cst_91 = arith.constant 3.200000e+01 : f32
    %199 = vector.broadcast %cst_91 : f32 to vector<16x1xf32>
    %200 = arith.divf %198, %199 : vector<16x1xf32>
    %201 = arith.mulf %195, %195 : vector<16x1xf32>
    %202 = arith.subf %200, %201 : vector<16x1xf32>
    %203 = vector.broadcast %195 : vector<16x1xf32> to vector<16x32xf32>
    %204 = arith.subf %187, %203 : vector<16x32xf32>
    %cst_92 = arith.constant 9.99999996E-13 : f32
    %205 = vector.broadcast %cst_92 : f32 to vector<16x1xf32>
    %206 = arith.addf %202, %205 : vector<16x1xf32>
    %207 = math.rsqrt %206 : vector<16x1xf32>
    %208 = vector.broadcast %207 : vector<16x1xf32> to vector<16x32xf32>
    %209 = arith.mulf %204, %208 : vector<16x32xf32>
    %210 = vector.broadcast %189 : vector<1x32xf32> to vector<16x32xf32>
    %211 = arith.mulf %209, %210 : vector<16x32xf32>
    %212 = vector.broadcast %191 : vector<1x32xf32> to vector<16x32xf32>
    %213 = arith.addf %211, %212 : vector<16x32xf32>
    %c1 = arith.constant 1 : index
    %c0_93 = arith.constant 0 : index
    %c0_94 = arith.constant 0 : index
    %214 = vector.load %arg8[%c1, %c0_93, %c0_94] : memref<2x32x96xbf16, #tpu.memory_space<vmem>>, vector<1x32x96xbf16>
    %215 = vector.shape_cast %214 : vector<1x32x96xbf16> to vector<32x96xbf16>
    %c1_95 = arith.constant 1 : index
    %c0_96 = arith.constant 0 : index
    %c0_97 = arith.constant 0 : index
    %216 = vector.load %arg9[%c1_95, %c0_96, %c0_97] : memref<2x1x96xf32, #tpu.memory_space<vmem>>, vector<1x1x96xf32>
    %217 = vector.shape_cast %216 : vector<1x1x96xf32> to vector<1x96xf32>
    %218 = arith.truncf %213 : vector<16x32xf32> to vector<16x32xbf16>
    %cst_98 = arith.constant dense<0.000000e+00> : vector<16x96xf32>
    %219 = tpu.matmul %218, %215, %cst_98 {dimension_numbers = #tpu.dot_dimension_numbers<[1], [0], [0], [1], [0, 0, 1, 1], [], []>} : vector<16x32xbf16>, vector<32x96xbf16>, vector<16x96xf32> -> vector<16x96xf32>
    %220 = vector.broadcast %217 : vector<1x96xf32> to vector<16x96xf32>
    %221 = arith.addf %219, %220 : vector<16x96xf32>
    %222 = vector.extract_strided_slice %221 {offsets = [0, 0], sizes = [16, 32], strides = [1, 1]} : vector<16x96xf32> to vector<16x32xf32>
    %cst_99 = arith.constant 2.500000e-01 : f32
    %223 = vector.broadcast %cst_99 : f32 to vector<16x32xf32>
    %224 = arith.mulf %222, %223 : vector<16x32xf32>
    %225 = vector.shape_cast %224 : vector<16x32xf32> to vector<2x8x32xf32>
    %226 = vector.extract_strided_slice %221 {offsets = [0, 32], sizes = [16, 32], strides = [1, 1]} : vector<16x96xf32> to vector<16x32xf32>
    %227 = vector.shape_cast %226 : vector<16x32xf32> to vector<2x8x32xf32>
    %228 = vector.extract_strided_slice %221 {offsets = [0, 64], sizes = [16, 32], strides = [1, 1]} : vector<16x96xf32> to vector<16x32xf32>
    %229 = vector.shape_cast %228 : vector<16x32xf32> to vector<2x8x32xf32>
    %230 = vector.extract_strided_slice %225 {offsets = [0, 0, 0], sizes = [2, 8, 16], strides = [1, 1, 1]} : vector<2x8x32xf32> to vector<2x8x16xf32>
    %231 = arith.truncf %230 : vector<2x8x16xf32> to vector<2x8x16xbf16>
    %232 = vector.extract_strided_slice %227 {offsets = [0, 0, 0], sizes = [2, 8, 16], strides = [1, 1, 1]} : vector<2x8x32xf32> to vector<2x8x16xf32>
    %233 = arith.truncf %232 : vector<2x8x16xf32> to vector<2x8x16xbf16>
    %234 = vector.extract_strided_slice %229 {offsets = [0, 0, 0], sizes = [2, 8, 16], strides = [1, 1, 1]} : vector<2x8x32xf32> to vector<2x8x16xf32>
    %235 = arith.truncf %234 : vector<2x8x16xf32> to vector<2x8x16xbf16>
    "tpu.trace_start"() <{level = 10 : i32, message = "bqd,bkd->bqk"}> : () -> ()
    %cst_100 = arith.constant dense<0.000000e+00> : vector<2x8x8xf32>
    %236 = tpu.matmul %231, %233, %cst_100 {dimension_numbers = #tpu.dot_dimension_numbers<[2], [2], [1], [1], [0, 0, 0, 1, 1, 1], [0], [0]>} : vector<2x8x16xbf16>, vector<2x8x16xbf16>, vector<2x8x8xf32> -> vector<2x8x8xf32>
    "tpu.trace_stop"() : () -> ()
    %237 = arith.addf %236, %64 : vector<2x8x8xf32>
    %cst_101 = arith.constant dense<0xFF800000> : vector<2x8xf32>
    %238 = vector.multi_reduction <maximumf>, %237, %cst_101 [2] : vector<2x8x8xf32> to vector<2x8xf32>
    %239 = vector.shape_cast %238 : vector<2x8xf32> to vector<2x8x1xf32>
    %240 = vector.broadcast %239 : vector<2x8x1xf32> to vector<2x8x8xf32>
    %241 = arith.subf %237, %240 : vector<2x8x8xf32>
    %242 = math.exp %241 : vector<2x8x8xf32>
    %cst_102 = arith.constant dense<0.000000e+00> : vector<2x8xf32>
    %243 = vector.multi_reduction <add>, %242, %cst_102 [2] : vector<2x8x8xf32> to vector<2x8xf32>
    %244 = vector.shape_cast %243 : vector<2x8xf32> to vector<2x8x1xf32>
    %245 = tpu.reciprocal %244 {approx = true} : vector<2x8x1xf32> -> vector<2x8x1xf32>
    %246 = vector.broadcast %245 : vector<2x8x1xf32> to vector<2x8x8xf32>
    %247 = arith.mulf %242, %246 : vector<2x8x8xf32>
    %248 = arith.truncf %247 : vector<2x8x8xf32> to vector<2x8x8xbf16>
    "tpu.trace_start"() <{level = 10 : i32, message = "bqk,bkd->bqd"}> : () -> ()
    %cst_103 = arith.constant dense<0.000000e+00> : vector<2x8x16xf32>
    %249 = tpu.matmul %248, %235, %cst_103 {dimension_numbers = #tpu.dot_dimension_numbers<[2], [1], [1], [2], [0, 0, 0, 1, 1, 2], [0], [0]>} : vector<2x8x8xbf16>, vector<2x8x16xbf16>, vector<2x8x16xf32> -> vector<2x8x16xf32>
    "tpu.trace_stop"() : () -> ()
    %250 = vector.extract_strided_slice %225 {offsets = [0, 0, 16], sizes = [2, 8, 16], strides = [1, 1, 1]} : vector<2x8x32xf32> to vector<2x8x16xf32>
    %251 = arith.truncf %250 : vector<2x8x16xf32> to vector<2x8x16xbf16>
    %252 = vector.extract_strided_slice %227 {offsets = [0, 0, 16], sizes = [2, 8, 16], strides = [1, 1, 1]} : vector<2x8x32xf32> to vector<2x8x16xf32>
    %253 = arith.truncf %252 : vector<2x8x16xf32> to vector<2x8x16xbf16>
    %254 = vector.extract_strided_slice %229 {offsets = [0, 0, 16], sizes = [2, 8, 16], strides = [1, 1, 1]} : vector<2x8x32xf32> to vector<2x8x16xf32>
    %255 = arith.truncf %254 : vector<2x8x16xf32> to vector<2x8x16xbf16>
    "tpu.trace_start"() <{level = 10 : i32, message = "bqd,bkd->bqk"}> : () -> ()
    %cst_104 = arith.constant dense<0.000000e+00> : vector<2x8x8xf32>
    %256 = tpu.matmul %251, %253, %cst_104 {dimension_numbers = #tpu.dot_dimension_numbers<[2], [2], [1], [1], [0, 0, 0, 1, 1, 1], [0], [0]>} : vector<2x8x16xbf16>, vector<2x8x16xbf16>, vector<2x8x8xf32> -> vector<2x8x8xf32>
    "tpu.trace_stop"() : () -> ()
    %257 = arith.addf %256, %64 : vector<2x8x8xf32>
    %cst_105 = arith.constant dense<0xFF800000> : vector<2x8xf32>
    %258 = vector.multi_reduction <maximumf>, %257, %cst_105 [2] : vector<2x8x8xf32> to vector<2x8xf32>
    %259 = vector.shape_cast %258 : vector<2x8xf32> to vector<2x8x1xf32>
    %260 = vector.broadcast %259 : vector<2x8x1xf32> to vector<2x8x8xf32>
    %261 = arith.subf %257, %260 : vector<2x8x8xf32>
    %262 = math.exp %261 : vector<2x8x8xf32>
    %cst_106 = arith.constant dense<0.000000e+00> : vector<2x8xf32>
    %263 = vector.multi_reduction <add>, %262, %cst_106 [2] : vector<2x8x8xf32> to vector<2x8xf32>
    %264 = vector.shape_cast %263 : vector<2x8xf32> to vector<2x8x1xf32>
    %265 = tpu.reciprocal %264 {approx = true} : vector<2x8x1xf32> -> vector<2x8x1xf32>
    %266 = vector.broadcast %265 : vector<2x8x1xf32> to vector<2x8x8xf32>
    %267 = arith.mulf %262, %266 : vector<2x8x8xf32>
    %268 = arith.truncf %267 : vector<2x8x8xf32> to vector<2x8x8xbf16>
    "tpu.trace_start"() <{level = 10 : i32, message = "bqk,bkd->bqd"}> : () -> ()
    %cst_107 = arith.constant dense<0.000000e+00> : vector<2x8x16xf32>
    %269 = tpu.matmul %268, %255, %cst_107 {dimension_numbers = #tpu.dot_dimension_numbers<[2], [1], [1], [2], [0, 0, 0, 1, 1, 2], [0], [0]>} : vector<2x8x8xbf16>, vector<2x8x16xbf16>, vector<2x8x16xf32> -> vector<2x8x16xf32>
    "tpu.trace_stop"() : () -> ()
    %270 = tpu.concatenate %249, %269 in 2 : vector<2x8x16xf32>, vector<2x8x16xf32> -> vector<2x8x32xf32>
    %271 = vector.shape_cast %270 : vector<2x8x32xf32> to vector<16x32xf32>
    %c1_108 = arith.constant 1 : index
    %c0_109 = arith.constant 0 : index
    %c0_110 = arith.constant 0 : index
    %272 = vector.load %arg10[%c1_108, %c0_109, %c0_110] : memref<2x32x32xbf16, #tpu.memory_space<vmem>>, vector<1x32x32xbf16>
    %273 = vector.shape_cast %272 : vector<1x32x32xbf16> to vector<32x32xbf16>
    %c1_111 = arith.constant 1 : index
    %c0_112 = arith.constant 0 : index
    %c0_113 = arith.constant 0 : index
    %274 = vector.load %arg11[%c1_111, %c0_112, %c0_113] : memref<2x1x32xf32, #tpu.memory_space<vmem>>, vector<1x1x32xf32>
    %275 = vector.shape_cast %274 : vector<1x1x32xf32> to vector<1x32xf32>
    %276 = arith.truncf %271 : vector<16x32xf32> to vector<16x32xbf16>
    %cst_114 = arith.constant dense<0.000000e+00> : vector<16x32xf32>
    %277 = tpu.matmul %276, %273, %cst_114 {dimension_numbers = #tpu.dot_dimension_numbers<[1], [0], [0], [1], [0, 0, 1, 1], [], []>} : vector<16x32xbf16>, vector<32x32xbf16>, vector<16x32xf32> -> vector<16x32xf32>
    %278 = vector.broadcast %275 : vector<1x32xf32> to vector<16x32xf32>
    %279 = arith.addf %277, %278 : vector<16x32xf32>
    %280 = arith.addf %213, %279 : vector<16x32xf32>
    %c1_115 = arith.constant 1 : index
    %c0_116 = arith.constant 0 : index
    %c0_117 = arith.constant 0 : index
    %281 = vector.load %arg12[%c1_115, %c0_116, %c0_117] : memref<2x1x32xf32, #tpu.memory_space<vmem>>, vector<1x1x32xf32>
    %282 = vector.shape_cast %281 : vector<1x1x32xf32> to vector<1x32xf32>
    %c1_118 = arith.constant 1 : index
    %c0_119 = arith.constant 0 : index
    %c0_120 = arith.constant 0 : index
    %283 = vector.load %arg13[%c1_118, %c0_119, %c0_120] : memref<2x1x32xf32, #tpu.memory_space<vmem>>, vector<1x1x32xf32>
    %284 = vector.shape_cast %283 : vector<1x1x32xf32> to vector<1x32xf32>
    %cst_121 = arith.constant dense<0.000000e+00> : vector<16xf32>
    %285 = vector.multi_reduction <add>, %280, %cst_121 [1] : vector<16x32xf32> to vector<16xf32>
    %286 = vector.shape_cast %285 : vector<16xf32> to vector<16x1xf32>
    %cst_122 = arith.constant 3.200000e+01 : f32
    %287 = vector.broadcast %cst_122 : f32 to vector<16x1xf32>
    %288 = arith.divf %286, %287 : vector<16x1xf32>
    %289 = arith.mulf %280, %280 : vector<16x32xf32>
    %cst_123 = arith.constant dense<0.000000e+00> : vector<16xf32>
    %290 = vector.multi_reduction <add>, %289, %cst_123 [1] : vector<16x32xf32> to vector<16xf32>
    %291 = vector.shape_cast %290 : vector<16xf32> to vector<16x1xf32>
    %cst_124 = arith.constant 3.200000e+01 : f32
    %292 = vector.broadcast %cst_124 : f32 to vector<16x1xf32>
    %293 = arith.divf %291, %292 : vector<16x1xf32>
    %294 = arith.mulf %288, %288 : vector<16x1xf32>
    %295 = arith.subf %293, %294 : vector<16x1xf32>
    %296 = vector.broadcast %288 : vector<16x1xf32> to vector<16x32xf32>
    %297 = arith.subf %280, %296 : vector<16x32xf32>
    %cst_125 = arith.constant 9.99999996E-13 : f32
    %298 = vector.broadcast %cst_125 : f32 to vector<16x1xf32>
    %299 = arith.addf %295, %298 : vector<16x1xf32>
    %300 = math.rsqrt %299 : vector<16x1xf32>
    %301 = vector.broadcast %300 : vector<16x1xf32> to vector<16x32xf32>
    %302 = arith.mulf %297, %301 : vector<16x32xf32>
    %303 = vector.broadcast %282 : vector<1x32xf32> to vector<16x32xf32>
    %304 = arith.mulf %302, %303 : vector<16x32xf32>
    %305 = vector.broadcast %284 : vector<1x32xf32> to vector<16x32xf32>
    %306 = arith.addf %304, %305 : vector<16x32xf32>
    %c1_126 = arith.constant 1 : index
    %c0_127 = arith.constant 0 : index
    %c0_128 = arith.constant 0 : index
    %307 = vector.load %arg14[%c1_126, %c0_127, %c0_128] : memref<2x32x64xbf16, #tpu.memory_space<vmem>>, vector<1x32x64xbf16>
    %308 = vector.shape_cast %307 : vector<1x32x64xbf16> to vector<32x64xbf16>
    %c1_129 = arith.constant 1 : index
    %c0_130 = arith.constant 0 : index
    %c0_131 = arith.constant 0 : index
    %309 = vector.load %arg15[%c1_129, %c0_130, %c0_131] : memref<2x1x64xf32, #tpu.memory_space<vmem>>, vector<1x1x64xf32>
    %310 = vector.shape_cast %309 : vector<1x1x64xf32> to vector<1x64xf32>
    %311 = arith.truncf %306 : vector<16x32xf32> to vector<16x32xbf16>
    %cst_132 = arith.constant dense<0.000000e+00> : vector<16x64xf32>
    %312 = tpu.matmul %311, %308, %cst_132 {dimension_numbers = #tpu.dot_dimension_numbers<[1], [0], [0], [1], [0, 0, 1, 1], [], []>} : vector<16x32xbf16>, vector<32x64xbf16>, vector<16x64xf32> -> vector<16x64xf32>
    %313 = vector.broadcast %310 : vector<1x64xf32> to vector<16x64xf32>
    %314 = arith.addf %312, %313 : vector<16x64xf32>
    %315 = arith.mulf %314, %314 : vector<16x64xf32>
    %316 = arith.mulf %314, %315 : vector<16x64xf32>
    %cst_133 = arith.constant 4.471500e-02 : f32
    %317 = vector.broadcast %cst_133 : f32 to vector<16x64xf32>
    %318 = arith.mulf %317, %316 : vector<16x64xf32>
    %319 = arith.addf %314, %318 : vector<16x64xf32>
    %cst_134 = arith.constant 0.797884583 : f32
    %320 = vector.broadcast %cst_134 : f32 to vector<16x64xf32>
    %321 = arith.mulf %320, %319 : vector<16x64xf32>
    %322 = math.tanh %321 : vector<16x64xf32>
    %cst_135 = arith.constant 1.000000e+00 : f32
    %323 = vector.broadcast %cst_135 : f32 to vector<16x64xf32>
    %324 = arith.addf %323, %322 : vector<16x64xf32>
    %cst_136 = arith.constant 5.000000e-01 : f32
    %325 = vector.broadcast %cst_136 : f32 to vector<16x64xf32>
    %326 = arith.mulf %325, %324 : vector<16x64xf32>
    %327 = arith.mulf %314, %326 : vector<16x64xf32>
    %c1_137 = arith.constant 1 : index
    %c0_138 = arith.constant 0 : index
    %c0_139 = arith.constant 0 : index
    %328 = vector.load %arg16[%c1_137, %c0_138, %c0_139] : memref<2x64x32xbf16, #tpu.memory_space<vmem>>, vector<1x64x32xbf16>
    %329 = vector.shape_cast %328 : vector<1x64x32xbf16> to vector<64x32xbf16>
    %c1_140 = arith.constant 1 : index
    %c0_141 = arith.constant 0 : index
    %c0_142 = arith.constant 0 : index
    %330 = vector.load %arg17[%c1_140, %c0_141, %c0_142] : memref<2x1x32xf32, #tpu.memory_space<vmem>>, vector<1x1x32xf32>
    %331 = vector.shape_cast %330 : vector<1x1x32xf32> to vector<1x32xf32>
    %332 = arith.truncf %327 : vector<16x64xf32> to vector<16x64xbf16>
    %cst_143 = arith.constant dense<0.000000e+00> : vector<16x32xf32>
    %333 = tpu.matmul %332, %329, %cst_143 {dimension_numbers = #tpu.dot_dimension_numbers<[1], [0], [0], [1], [0, 0, 1, 1], [], []>} : vector<16x64xbf16>, vector<64x32xbf16>, vector<16x32xf32> -> vector<16x32xf32>
    %334 = vector.broadcast %331 : vector<1x32xf32> to vector<16x32xf32>
    %335 = arith.addf %333, %334 : vector<16x32xf32>
    %336 = arith.addf %306, %335 : vector<16x32xf32>
    %c1_144 = arith.constant 1 : index
    %c0_145 = arith.constant 0 : index
    %c0_146 = arith.constant 0 : index
    %337 = vector.load %arg18[%c1_144, %c0_145, %c0_146] : memref<2x1x32xf32, #tpu.memory_space<vmem>>, vector<1x1x32xf32>
    %338 = vector.shape_cast %337 : vector<1x1x32xf32> to vector<1x32xf32>
    %c1_147 = arith.constant 1 : index
    %c0_148 = arith.constant 0 : index
    %c0_149 = arith.constant 0 : index
    %339 = vector.load %arg19[%c1_147, %c0_148, %c0_149] : memref<2x1x32xf32, #tpu.memory_space<vmem>>, vector<1x1x32xf32>
    %340 = vector.shape_cast %339 : vector<1x1x32xf32> to vector<1x32xf32>
    %cst_150 = arith.constant dense<0.000000e+00> : vector<16xf32>
    %341 = vector.multi_reduction <add>, %336, %cst_150 [1] : vector<16x32xf32> to vector<16xf32>
    %342 = vector.shape_cast %341 : vector<16xf32> to vector<16x1xf32>
    %cst_151 = arith.constant 3.200000e+01 : f32
    %343 = vector.broadcast %cst_151 : f32 to vector<16x1xf32>
    %344 = arith.divf %342, %343 : vector<16x1xf32>
    %345 = arith.mulf %336, %336 : vector<16x32xf32>
    %cst_152 = arith.constant dense<0.000000e+00> : vector<16xf32>
    %346 = vector.multi_reduction <add>, %345, %cst_152 [1] : vector<16x32xf32> to vector<16xf32>
    %347 = vector.shape_cast %346 : vector<16xf32> to vector<16x1xf32>
    %cst_153 = arith.constant 3.200000e+01 : f32
    %348 = vector.broadcast %cst_153 : f32 to vector<16x1xf32>
    %349 = arith.divf %347, %348 : vector<16x1xf32>
    %350 = arith.mulf %344, %344 : vector<16x1xf32>
    %351 = arith.subf %349, %350 : vector<16x1xf32>
    %352 = vector.broadcast %344 : vector<16x1xf32> to vector<16x32xf32>
    %353 = arith.subf %336, %352 : vector<16x32xf32>
    %cst_154 = arith.constant 9.99999996E-13 : f32
    %354 = vector.broadcast %cst_154 : f32 to vector<16x1xf32>
    %355 = arith.addf %351, %354 : vector<16x1xf32>
    %356 = math.rsqrt %355 : vector<16x1xf32>
    %357 = vector.broadcast %356 : vector<16x1xf32> to vector<16x32xf32>
    %358 = arith.mulf %353, %357 : vector<16x32xf32>
    %359 = vector.broadcast %338 : vector<1x32xf32> to vector<16x32xf32>
    %360 = arith.mulf %358, %359 : vector<16x32xf32>
    %361 = vector.broadcast %340 : vector<1x32xf32> to vector<16x32xf32>
    %362 = arith.addf %360, %361 : vector<16x32xf32>
    %c0_155 = arith.constant 0 : index
    %c0_156 = arith.constant 0 : index
    %363 = vector.load %arg20[%c0_155, %c0_156] : memref<32x128xbf16, #tpu.memory_space<vmem>>, vector<32x128xbf16>
    %c0_157 = arith.constant 0 : index
    %c0_158 = arith.constant 0 : index
    %364 = vector.load %arg21[%c0_157, %c0_158] : memref<1x128xf32, #tpu.memory_space<vmem>>, vector<1x128xf32>
    %365 = arith.truncf %362 : vector<16x32xf32> to vector<16x32xbf16>
    %cst_159 = arith.constant dense<0.000000e+00> : vector<16x128xf32>
    %366 = tpu.matmul %365, %363, %cst_159 {dimension_numbers = #tpu.dot_dimension_numbers<[1], [0], [0], [1], [0, 0, 1, 1], [], []>} : vector<16x32xbf16>, vector<32x128xbf16>, vector<16x128xf32> -> vector<16x128xf32>
    %367 = vector.broadcast %364 : vector<1x128xf32> to vector<16x128xf32>
    %368 = arith.addf %366, %367 : vector<16x128xf32>
    %369 = math.tanh %368 : vector<16x128xf32>
    %c0_160 = arith.constant 0 : index
    %c0_161 = arith.constant 0 : index
    %370 = vector.load %arg22[%c0_160, %c0_161] : memref<16x128xf32, #tpu.memory_space<vmem>>, vector<16x128xf32>
    tpu.vector_store %arg22[%c0_160, %c0_161], %369 {strides = array<i32>} : memref<16x128xf32, #tpu.memory_space<vmem>>, vector<16x128xf32>,
    return
  }
}

</mosaic_0001>

<bundles_post_ra>
// kernel: model_forward.1
= control target key start
LH: loop header
LB: loop body
LE: loop exit
PB: predicated region body
PF: predicated region fallthrough
CT: control target
= control target key end

     0   :  { %v2642_v0 = vmov 0   ;;  %v2643_v3 = vmov 0.0   ;;  %v104_v8 = vlaneseq  ;;  %vm118_vm4 = vcmask 64512   ;;  %s2647_s24 = smov 80   ;;  %s2649_s25 = smov 48   ;;  %s3205_s0 = inlined_call_operand.vmem [shape: s32[2,8,1], index: 0, kind: input, shape index: {}]   ;;  %s3206_s3 = inlined_call_operand.vmem [shape: f32[2,8,32], index: 3, kind: input, shape index: {}]   ;;  %s3207_s1 = inlined_call_operand.vmem [shape: s32[2,1,8], index: 1, kind: input, shape index: {}]   ;;  %s3208_s2 = inlined_call_operand.vmem [shape: f32[2,8,8], index: 2, kind: input, shape index: {}]   ;;  %s3209_s4 = inlined_call_operand.vmem [shape: f32[2,8,32], index: 4, kind: input, shape index: {}]   ;;  %s3210_s5 = inlined_call_operand.vmem [shape: f32[1,32], index: 5, kind: input, shape index: {}]   ;;  %s3211_s8 = inlined_call_operand.vmem [shape: bf16[2,32,96], index: 8, kind: input, shape index: {}]   ;;  %s3212_s6 = inlined_call_operand.vmem [shape: f32[1,32], index: 6, kind: input, shape index: {}]   ;;  %s3213_s7 = inlined_call_operand.vmem [shape: f32[1,32], index: 7, kind: input, shape index: {}]   ;;  %s3214_s9 = inlined_call_operand.vmem [shape: f32[2,1,96], index: 9, kind: input, shape index: {}]   ;;  %s3215_s10 = inlined_call_operand.vmem [shape: bf16[2,32,32], index: 10, kind: input, shape index: {}]   ;;  %s3216_s11 = inlined_call_operand.vmem [shape: f32[2,1,32], index: 11, kind: input, shape index: {}]   ;;  %s3217_s14 = inlined_call_operand.vmem [shape: bf16[2,32,64], index: 14, kind: input, shape index: {}]   ;;  %s3218_s12 = inlined_call_operand.vmem [shape: f32[2,1,32], index: 12, kind: input, shape index: {}]   ;;  %s3219_s13 = inlined_call_operand.vmem [shape: f32[2,1,32], index: 13, kind: input, shape index: {}]   ;;  %s3220_s16 = inlined_call_operand.vmem [shape: bf16[2,64,32], index: 16, kind: input, shape index: {}]   ;;  %s3221_s15 = inlined_call_operand.vmem [shape: f32[2,1,64], index: 15, kind: input, shape index: {}]   ;;  %s3222_s17 = inlined_call_operand.vmem [shape: f32[2,1,32], index: 17, kind: input, shape index: {}]   ;;  %s3223_s18 = inlined_call_operand.vmem [shape: f32[2,1,32], index: 18, kind: input, shape index: {}]   ;;  %s3224_s19 = inlined_call_operand.vmem [shape: f32[2,1,32], index: 19, kind: input, shape index: {}]   ;;  %s3225_s20 = inlined_call_operand.vmem [shape: bf16[32,128], index: 20, kind: input, shape index: {}]   ;;  %s3226_s21 = inlined_call_operand.vmem [shape: f32[1,128], index: 21, kind: input, shape index: {}]   ;;  %s3227_s22 = inlined_call_operand.vmem [shape: f32[16,128], index: 22, kind: output, shape index: {}]  }
   0x1   :  { %3234 = sst [smem:[#allocation2_spill]] %s3205_s0  ;;  %2540 = vset.pattern.permute.xlu0 %v2642_v0  ;;  %2345 = vmatprep.subr.mxu1 %v2643_v3  ;;  %vm2644_vm5 = vmmov 0   ;;  %vm310_vm6 = vcmask 261120   ;;  %vm439_vm7 = vcmask 130048   ;;  %vm564_vm8 = vcmask 1043456  }
   0x2   :  { %3235 = sst [smem:[#allocation3_spill]] %s3206_s3  ;;  %2541 = vset.pattern.permute.xlu1 %v2642_v0  ;;  %2355 = vmatprep.subr.bf16.mxu0 %v2643_v3  ;;  %v105_v10 = vshrl.u32 %v104_v8, 7  ;;  %vm1132_vm9 = vcmask 523264  }
   0x3   :  { %3236 = sst [smem:[#allocation4_spill]] %s3207_s1  ;;  %2347 = vmatprep.mubr.msk.f32.mxu1 %vm2644_vm5, %v2643_v3  ;;  %2359 = vmatprep.mubr.msk.bf16.mxu0 %vm2644_vm5, %v2643_v3 }
   0x4   :  { %3237 = sst [smem:[#allocation5_spill]] %s3208_s2  ;;  %v106_v12 = vsub.s32 0, %v105_v10 }
   0x5   :  { %3238 = sst [smem:[#allocation6_spill]] %s3209_s4 }
   0x6   :  { %3239 = sst [smem:[#allocation7_spill]] %s3210_s5  ;;  %s2646_s5 = smov 64  }
   0x7   :  { %3240 = sst [smem:[#allocation8_spill]] %s3211_s8 }
   0x8   :  { %s3241_s29 = sld [smem:[#allocation2_spill]] }
   0x9   :  { %s3242_s3 = sld [smem:[#allocation3_spill]] }
   0xa   :  { %s3243_s8 = sld [smem:[#allocation4_spill]] }
   0xb   :  { %s3244_s2 = sld [smem:[#allocation5_spill]] }
   0xe   :  { %v76_v1 = vld [vmem:[%s3241_s29] sm:$0xff]  ;;  %v77_v2 = vld [vmem:[%s3241_s29 + $0x8] sm:$0xff]  ;;  %s2650_s29 = smov 16  }
   0xf   :  { %vm78_vm0 = vcmp.eq.s32.totalorder %v76_v1, 0  ;;  %vm79_vm1 = vcmp.eq.s32.totalorder %v77_v2, 0  ;;  %v74_v6 = vld [vmem:[%s3242_s3] sm:$0xff]  ;;  %v75_v34 = vld [vmem:[%s3242_s3 + $0x8] sm:$0xff]  ;;  %s3245_s3 = sld [smem:[#allocation6_spill]] }
  0x10   :  { %v2177_v4 = vsel %vm78_vm0, 1.0, %v2643_v3  ;;  %v2178_v5 = vsel %vm79_vm1, 1.0, %v2643_v3  ;;  %2346 = vmatpush3.msra.mxu1 %v74_v6  ;;  %v84_v9 = vld [vmem:[%s3243_s8] sm:$0x1]  ;;  %v85_v11 = vld [vmem:[%s3243_s8 + $0x1] sm:$0x1] }
  0x11   :  { %94 = vperm.xlu0 %2540, %v2177_v4   ;;  %v277_v7 = vsub.f32 1.0, %v2177_v4  ;;  %2350 = vmatprep.subr.mxu1 %v2643_v3  ;;  %vm86_vm2 = vcmp.ge.s32.totalorder %v84_v9, 2  ;;  %vm87_vm3 = vcmp.ge.s32.totalorder %v85_v11, 2  ;;  %v2791_v17 = vld [vmem:[%s3244_s2] sm:$0xff]  ;;  %v2797_v22 = vld [vmem:[%s3244_s2 + $0x8] sm:$0xff]  ;;  %v278_v27 = vsub.f32 1.0, %v2178_v5 }
  0x12   :  { %v2179_v13 = vsel %vm86_vm2, 1.0, %v2643_v3  ;;  %v2180_v15 = vsel %vm87_vm3, 1.0, %v2643_v3  ;;  %s3246_s8 = sld [smem:[#allocation7_spill]] }
  0x13   :  { %v107_v14 = vrot.slane %v2179_v13, %v106_v12  ;;  %v111_v19 = vrot.slane %v2180_v15, %v106_v12  ;;  %s3247_s2 = sld [smem:[#allocation8_spill]] }
  0x15   :  { %99 = vperm.xlu0 %2540, %v2178_v5   ;;  %v295_v42 = vld [vmem:[%s3245_s3] sm:$0xff]  ;;  %v296_v50 = vld [vmem:[%s3245_s3 + $0x8] sm:$0xff] }
  0x18   :  { %v2183_v47 = vld [vmem:[%s3246_s8] ss:$0 sm:$0xff]  ;;  %s2648_s8 = smov 112  }
  0x19   :  { %281 = vperm.xlu0 %2540, %v277_v7   ;;  %v2552_v62 = vld [vmem:[%s3247_s2 + $0x8] sm:$0xff]   ;;  %v2553_v63 = vld [vmem:[%s3247_s2] sm:$0xff]  }
  0x1a   :  { %2356 = vmatpush3.bf16.msra.mxu0 %v2552_v62 }
  0x1b   :  { %2357 = vmatprep.subr.bf16.mxu0 %v2643_v3 }
  0x1e   :  { %2358 = vmatpush3.bf16.msra.mxu0 %v2553_v63 }
  0x1f   :  { %2369 = vmatprep.subr.bf16.mxu0 %v2643_v3 }
  0x8c   :  { %v95_v16 = vpop.permute.xlu0 %94 }
  0x8d   :  { %v114_v18 = vmul.f32 %v107_v14, %v95_v16 }
  0x8f   :  { %v116_v20 = vmul.f32 %v114_v18, %v2791_v17 }
  0x90   :  { %v100_v21 = vpop.permute.xlu0 %99 }
  0x91   :  { %v115_v23 = vmul.f32 %v111_v19, %v100_v21  ;;  %v119_v24 = vsel %vm118_vm4, %v116_v20, 0.0  ;;  %v2184_v19 = vld [vmem:[%s3212_s6] ss:$0 sm:$0xff] }
  0x92   :  { %120 = vadd.xlane.f32.xlu1 %v119_v24 }
  0x93   :  { %v117_v25 = vmul.f32 %v115_v23, %v2797_v22 }
  0x94   :  { %v282_v37 = vpop.permute.xlu0 %281 }
  0x95   :  { %v122_v26 = vsel %vm118_vm4, %v117_v25, 0.0  ;;  %v289_v40 = vmul.f32 %v282_v37, %v74_v6 }
  0x96   :  { %123 = vadd.xlane.f32.xlu1 %v122_v26 }
  0xa7   :  { %286 = vperm.xlu1 %2541, %v278_v27  }
 0x11b   :  { %v121_v28 = vpop.xlane.xlu1 %120 }
 0x11c   :  { %v125_v29 = vadd.f32 1e-10, %v121_v28 }
 0x11e   :  { %2574 = vrcp.f32 %v125_v29 }
 0x11f   :  { %v124_v30 = vpop.xlane.xlu1 %123 }
 0x120   :  { %v126_v31 = vadd.f32 1e-10, %v124_v30  ;;  %v2186_v30 = vld [vmem:[%s3214_s9] ss:$0 sm:$0xff] }
 0x122   :  { %2576 = vrcp.f32 %v126_v31 }
 0x123   :  { %v287_v39 = vpop.permute.xlu1 %286 }
 0x124   :  { %v290_v45 = vmul.f32 %v287_v39, %v75_v34 }
 0x12b   :  { %v2575_v32 = vpop.eup %2574 }
 0x12c   :  { %v129_v33 = vmul.f32 %v2575_v32, %v116_v20 }
 0x12e   :  { %2348 = vmatmul.mubr.msk.f32.vlgmr.msra.gmra.mxu1 %vm118_vm4, %v129_v33 }
 0x12f   :  { %v2577_v35 = vpop.eup %2576  ;;  %2351 = vmatpush3.msra.mxu1 %v75_v34  ;;  %2352 = vmatprep.mubr.msk.f32.mxu1 %vm2644_vm5, %v2643_v3 }
 0x130   :  { %v130_v36 = vmul.f32 %v2577_v35, %v117_v25  ;;  %2363 = vmatprep.subr.bf16.mxu1 %v2643_v3  ;;  %v2185_v25 = vld [vmem:[%s3213_s7] ss:$0 sm:$0xff]  ;;  %s2645_s7 = smov 96  }
 0x132   :  { %2353 = vmatmul.mubr.msk.f32.vlgmr.msra.gmra.mxu1 %vm118_vm4, %v130_v36 }
 0x133   :  { %2365 = vmatprep.mubr.msk.bf16.mxu1 %vm2644_vm5, %v2643_v3 }
 0x1ee   :  { %v200_v38 = vpop.f32.mrf.mxu1 }
 0x1ef   :  { %v291_v41 = vmul.f32 %v200_v38, %v95_v16 }
 0x1f0   :  { %v2349_v43 = vpop.f32.mrf.mxu1 }
 0x1f1   :  { %v293_v44 = vadd.f32 %v291_v41, %v289_v40 }
 0x1f2   :  { %v273_v46 = vpop.f32.mrf.mxu1 }
 0x1f3   :  { %v297_v48 = vadd.f32 %v295_v42, %v293_v44  ;;  %v292_v49 = vmul.f32 %v273_v46, %v100_v21 }
 0x1f4   :  { %v2354_v51 = vpop.f32.mrf.mxu1 }
 0x1f5   :  { %v294_v52 = vadd.f32 %v292_v49, %v290_v45  ;;  %v306_v53 = vadd.f32 %v2183_v47, %v297_v48  ;;  %v359_v49 = vsub.f32 1.0, %v2797_v22 }
 0x1f7   :  { %v298_v54 = vadd.f32 %v296_v50, %v294_v52  ;;  %v311_v55 = vsel %vm310_vm6, %v306_v53, 0.0  ;;  %v320_v56 = vmul.f32 %v306_v53, %v306_v53  ;;  %v2877_v51 = vmul.f32 -10000.0, %v359_v49 }
 0x1f8   :  { %312 = vadd.xlane.f32.xlu0 %v311_v55 }
 0x1f9   :  { %v307_v57 = vadd.f32 %v2183_v47, %v298_v54  ;;  %v322_v59 = vsel %vm310_vm6, %v320_v56, 0.0  ;;  %v358_v47 = vsub.f32 1.0, %v2791_v17 }
 0x1fb   :  { %v314_v58 = vsel %vm310_vm6, %v307_v57, 0.0  ;;  %v321_v60 = vmul.f32 %v307_v57, %v307_v57  ;;  %v2874_v48 = vmul.f32 -10000.0, %v358_v47 }
 0x1fc   :  { %315 = vadd.xlane.f32.xlu1 %v314_v58  ;;  %323 = vadd.xlane.f32.xlu0 %v322_v59 }
 0x1fd   :  { %v325_v61 = vsel %vm310_vm6, %v321_v60, 0.0 }
 0x200   :  { %326 = vadd.xlane.f32.xlu0 %v325_v61 }
 0x281   :  { %v313_v0 = vpop.xlane.xlu0 %312 }
 0x282   :  { %v318_v1 = vmul.f32 0.03125, %v313_v0 }
 0x284   :  { %v330_v5 = vmul.f32 %v318_v1, %v318_v1  ;;  %v334_v15 = vsub.f32 %v306_v53, %v318_v1 }
 0x285   :  { %v316_v2 = vpop.xlane.xlu1 %315  ;;  %v324_v4 = vpop.xlane.xlu0 %323 }
 0x286   :  { %v319_v6 = vmul.f32 0.03125, %v316_v2  ;;  %v328_v7 = vmul.f32 0.03125, %v324_v4 }
 0x288   :  { %v332_v8 = vsub.f32 %v328_v7, %v330_v5  ;;  %v331_v10 = vmul.f32 %v319_v6, %v319_v6  ;;  %v335_v20 = vsub.f32 %v307_v57, %v319_v6 }
 0x289   :  { %v327_v9 = vpop.xlane.xlu0 %326 }
 0x28a   :  { %v336_v11 = vadd.f32 1e-12, %v332_v8  ;;  %v329_v12 = vmul.f32 0.03125, %v327_v9 }
 0x28c   :  { %2578 = vrsqrt.f32 %v336_v11  ;;  %v333_v13 = vsub.f32 %v329_v12, %v331_v10 }
 0x28e   :  { %v337_v14 = vadd.f32 1e-12, %v333_v13 }
 0x290   :  { %2580 = vrsqrt.f32 %v337_v14 }
 0x299   :  { %v2579_v16 = vpop.eup %2578 }
 0x29a   :  { %v340_v18 = vmul.f32 %v2579_v16, %v334_v15 }
 0x29c   :  { %v348_v24 = vmul.f32 %v2184_v19, %v340_v18 }
 0x29d   :  { %v2581_v21 = vpop.eup %2580 }
 0x29e   :  { %v341_v23 = vmul.f32 %v2581_v21, %v335_v20  ;;  %v2843_v27 = vadd.f32 %v2185_v25, %v348_v24 }
 0x2a0   :  { %v349_v26 = vmul.f32 %v2184_v19, %v341_v23 }
 0x2a2   :  { %v2845_v28 = vadd.f32 %v2185_v25, %v349_v26 }
 0x2a4   :  { %v367_v29 = vpack.c.bf16 %v2845_v28, %v2843_v27 }
 0x2a6   :  { %2360 = vmatmul.mubr.msk.bf16.vlgmr.msra.gmra.mxu0 %vm310_vm6, %v367_v29 }
 0x2a7   :  { %2371 = vmatprep.mubr.msk.bf16.mxu0 %vm2644_vm5, %v2643_v3 }
 0x366   :  { %v423_v31 = vpop.f32.mrf.mxu0 }
 0x367   :  { %v424_v32 = vadd.f32 %v2186_v30, %v423_v31 }
 0x368   :  { %v2361_v33 = vpop.f32.mrf.mxu0 }
 0x369   :  { %v2855_v34 = vpack.c.bf16 %v424_v32, %v424_v32  ;;  %v430_v41 = vmul.f32 0.25, %v424_v32 }
 0x36a   :  { %v426_v35 = vpop.f32.mrf.mxu0 }
 0x36b   :  { %v427_v36 = vadd.f32 %v2186_v30, %v426_v35  ;;  %437 = vrot.lane.b32.xlu0 %v2855_v34, %s2645_s7  ;;  %v432_v44 = vpack.c.bf16 %v430_v41, %v430_v41 }
 0x36c   :  { %v2362_v37 = vpop.f32.mrf.mxu0 }
 0x36d   :  { %v2859_v38 = vpack.c.bf16 %v427_v36, %v427_v36  ;;  %v431_v45 = vmul.f32 0.25, %v427_v36 }
 0x36f   :  { %487 = vrot.lane.b32.xlu1 %v2859_v38, %s2645_s7  ;;  %v433_v46 = vpack.c.bf16 %v431_v45, %v431_v45 }
 0x3dd   :  { %v438_v39 = vpop.permute.xlu0 %437 }
 0x3de   :  { %v444_v40 = vsel %vm439_vm7, %v438_v39, 0 }
 0x3df   :  { %2364 = vmatpush3.bf16.xpose.msra.mxu1 %v444_v40 }
 0x3e0   :  { %2375 = vmatprep.subr.bf16.mxu1 %v2643_v3 }
 0x3e1   :  { %v488_v42 = vpop.permute.xlu1 %487 }
 0x3e2   :  { %v493_v43 = vsel %vm439_vm7, %v488_v42, 0 }
 0x3e3   :  { %2370 = vmatpush3.bf16.xpose.msra.mxu0 %v493_v43 }
 0x3e4   :  { %2381 = vmatprep.subr.bf16.mxu0 %v2643_v3 }
 0x3e6   :  { %2366 = vmatmul.mubr.msk.bf16.vlgmr.msra.gmra.mxu1 %vm439_vm7, %v432_v44 }
 0x3e7   :  { %2377 = vmatprep.mubr.msk.bf16.mxu1 %vm2644_vm5, %v2643_v3 }
 0x3ea   :  { %2372 = vmatmul.mubr.msk.bf16.vlgmr.msra.gmra.mxu0 %vm439_vm7, %v433_v46 }
 0x3eb   :  { %2383 = vmatprep.mubr.msk.bf16.mxu0 %vm2644_vm5, %v2643_v3 }
 0x4a6   :  { %v480_v50 = vpop.f32.mrf.mxu1 }
 0x4a7   :  { %v481_v52 = vadd.f32 %v480_v50, %v2874_v48 }
 0x4a8   :  { %v2367_v53 = vpop.f32.mrf.mxu1 }
 0x4a9   :  { %v535_v54 = vsel %vm118_vm4, %v481_v52, -inf }
 0x4aa   :  { %536 = vmax.xlane.f32.xlu0 %v535_v54  ;;  %v483_v55 = vpop.f32.mrf.mxu1  ;;  %v529_v56 = vpop.f32.mrf.mxu0 }
 0x4ab   :  { %v530_v57 = vadd.f32 %v529_v56, %v2877_v51 }
 0x4ac   :  { %v2368_v58 = vpop.f32.mrf.mxu1  ;;  %v2373_v59 = vpop.f32.mrf.mxu0 }
 0x4ad   :  { %v538_v17 = vsel %vm118_vm4, %v530_v57, -inf }
 0x4ae   :  { %539 = vmax.xlane.f32.xlu1 %v538_v17  ;;  %v532_v60 = vpop.f32.mrf.mxu0 }
 0x4b0   :  { %v2374_v22 = vpop.f32.mrf.mxu0 }
 0x4bf   :  { %608 = vrot.lane.b32.xlu1 %v2859_v38, %s2646_s5 }
 0x4c0   :  { %559 = vrot.lane.b32.xlu0 %v2855_v34, %s2646_s5 }
 0x4c3   :  { %659 = vrot.lane.b32.xlu1 %v2855_v34, %s2647_s24 }
 0x4c7   :  { %657 = vrot.lane.b32.xlu1 %v432_v44, %s2648_s8 }
 0x533   :  { %v537_v61 = vpop.xlane.xlu0 %536 }
 0x534   :  { %v541_v62 = vsub.f32 %v481_v52, %v537_v61 }
 0x536   :  { %v543_v63 = vmul.f32 1.442695, %v541_v62 }
 0x537   :  { %v560_v0 = vpop.permute.xlu0 %559  ;;  %v540_v1 = vpop.xlane.xlu1 %539 }
 0x538   :  { %2582 = vpow2.f32 %v543_v63  ;;  %v566_v2 = vsel %vm564_vm8, %v560_v0, 0  ;;  %v542_v4 = vsub.f32 %v530_v57, %v540_v1 }
 0x539   :  { %2376 = vmatpush3.bf16.msra.mxu1 %v566_v2 }
 0x53a   :  { %v545_v5 = vmul.f32 1.442695, %v542_v4  ;;  %2387 = vmatprep.subr.bf16.mxu1 %v2643_v3 }
 0x53b   :  { %v609_v6 = vpop.permute.xlu1 %608 }
 0x53c   :  { %2584 = vpow2.f32 %v545_v5  ;;  %v614_v7 = vsel %vm564_vm8, %v609_v6, 0 }
 0x53d   :  { %2382 = vmatpush3.bf16.msra.mxu0 %v614_v7 }
 0x53e   :  { %2393 = vmatprep.subr.bf16.mxu0 %v2643_v3 }
 0x53f   :  { %v660_v16 = vpop.permute.xlu1 %659 }
 0x540   :  { %v665_v20 = vsel %vm439_vm7, %v660_v16, 0 }
 0x543   :  { %v658_v26 = vpop.permute.xlu1 %657 }
 0x545   :  { %v2583_v8 = vpop.eup %2582 }
 0x546   :  { %v547_v9 = vsel %vm118_vm4, %v2583_v8, 0.0 }
 0x547   :  { %548 = vadd.xlane.f32.xlu0 %v547_v9  ;;  %v2554_v9 = vld [vmem:[%s3215_s10 + $0x8] sm:$0xff]  }
 0x549   :  { %v2585_v10 = vpop.eup %2584 }
 0x54a   :  { %v550_v11 = vsel %vm118_vm4, %v2585_v10, 0.0 }
 0x54b   :  { %551 = vadd.xlane.f32.xlu0 %v550_v11 }
 0x561   :  { %710 = vrot.lane.b32.xlu0 %v2859_v38, %s2647_s24 }
 0x565   :  { %708 = vrot.lane.b32.xlu0 %v433_v46, %s2648_s8 }
 0x5d0   :  { %v549_v12 = vpop.xlane.xlu0 %548 }
 0x5d1   :  { %2586 = vrcp.f32 %v549_v12 }
 0x5d4   :  { %v552_v13 = vpop.xlane.xlu0 %551 }
 0x5d5   :  { %2588 = vrcp.f32 %v552_v13 }
 0x5d8   :  { %v711_v23 = vpop.permute.xlu0 %710 }
 0x5d9   :  { %v716_v25 = vsel %vm439_vm7, %v711_v23, 0 }
 0x5dc   :  { %v709_v29 = vpop.permute.xlu0 %708 }
 0x5de   :  { %v2587_v14 = vpop.eup %2586 }
 0x5df   :  { %v555_v15 = vmul.f32 %v2587_v14, %v2583_v8 }
 0x5e1   :  { %v557_v18 = vpack.c.bf16 %v555_v15, %v555_v15 }
 0x5e2   :  { %v2589_v19 = vpop.eup %2588 }
 0x5e3   :  { %2378 = vmatmul.mubr.msk.bf16.vlgmr.msra.gmra.mxu1 %vm118_vm4, %v557_v18  ;;  %v556_v21 = vmul.f32 %v2589_v19, %v2585_v10  ;;  %v2555_v10 = vld [vmem:[%s3215_s10] sm:$0xff]  }
 0x5e4   :  { %2388 = vmatpush3.bf16.xpose.msra.mxu1 %v665_v20  ;;  %2389 = vmatprep.mubr.msk.bf16.mxu1 %vm2644_vm5, %v2643_v3 }
 0x5e5   :  { %v558_v24 = vpack.c.bf16 %v556_v21, %v556_v21  ;;  %2399 = vmatprep.subr.bf16.mxu1 %v2643_v3 }
 0x5e7   :  { %2384 = vmatmul.mubr.msk.bf16.vlgmr.msra.gmra.mxu0 %vm118_vm4, %v558_v24 }
 0x5e8   :  { %2394 = vmatpush3.bf16.xpose.msra.mxu0 %v716_v25  ;;  %2395 = vmatprep.mubr.msk.bf16.mxu0 %vm2644_vm5, %v2643_v3 }
 0x5e9   :  { %2405 = vmatprep.subr.bf16.mxu0 %v2643_v3 }
 0x5eb   :  { %2390 = vmatmul.mubr.msk.bf16.vlgmr.msra.gmra.mxu1 %vm439_vm7, %v658_v26 }
 0x5ec   :  { %2401 = vmatprep.mubr.msk.bf16.mxu1 %vm2644_vm5, %v2643_v3 }
 0x5ef   :  { %2396 = vmatmul.mubr.msk.bf16.vlgmr.msra.gmra.mxu0 %vm439_vm7, %v709_v29 }
 0x5f0   :  { %2407 = vmatprep.mubr.msk.bf16.mxu0 %vm2644_vm5, %v2643_v3 }
 0x6a3   :  { %v2915_v30 = vpop.f32.mrf.mxu1 }
 0x6a5   :  { %v2379_v31 = vpop.f32.mrf.mxu1 }
 0x6a6   :  { %v2198_v31 = vld [vmem:[%s3216_s11] ss:$0 sm:$0xff] }
 0x6a7   :  { %v605_v32 = vpop.f32.mrf.mxu1  ;;  %v2917_v33 = vpop.f32.mrf.mxu0 }
 0x6a9   :  { %v2380_v35 = vpop.f32.mrf.mxu1  ;;  %v2385_v36 = vpop.f32.mrf.mxu0 }
 0x6ab   :  { %v653_v37 = vpop.f32.mrf.mxu0  ;;  %v701_v39 = vpop.f32.mrf.mxu1 }
 0x6ac   :  { %v702_v40 = vadd.f32 %v701_v39, %v2874_v48 }
 0x6ad   :  { %v2386_v41 = vpop.f32.mrf.mxu0  ;;  %v2391_v42 = vpop.f32.mrf.mxu1 }
 0x6ae   :  { %v758_v43 = vsel %vm118_vm4, %v702_v40, -inf }
 0x6af   :  { %759 = vmax.xlane.f32.xlu1 %v758_v43  ;;  %v704_v44 = vpop.f32.mrf.mxu1  ;;  %v752_v45 = vpop.f32.mrf.mxu0 }
 0x6b0   :  { %v753_v46 = vadd.f32 %v752_v45, %v2877_v51 }
 0x6b1   :  { %v2392_v47 = vpop.f32.mrf.mxu1  ;;  %v2397_v49 = vpop.f32.mrf.mxu0 }
 0x6b2   :  { %v761_v50 = vsel %vm118_vm4, %v753_v46, -inf  ;;  %v2557_v47 = vld [vmem:[%s3217_s14] sm:$0xff]  }
 0x6b3   :  { %762 = vmax.xlane.f32.xlu0 %v761_v50  ;;  %v755_v52 = vpop.f32.mrf.mxu0 }
 0x6b5   :  { %v2398_v53 = vpop.f32.mrf.mxu0 }
 0x738   :  { %v760_v54 = vpop.xlane.xlu1 %759 }
 0x739   :  { %v764_v55 = vsub.f32 %v702_v40, %v760_v54 }
 0x73b   :  { %v766_v56 = vmul.f32 1.442695, %v764_v55 }
 0x73c   :  { %v763_v57 = vpop.xlane.xlu0 %762 }
 0x73d   :  { %2590 = vpow2.f32 %v766_v56  ;;  %v765_v58 = vsub.f32 %v753_v46, %v763_v57 }
 0x73f   :  { %v768_v59 = vmul.f32 1.442695, %v765_v58 }
 0x741   :  { %2592 = vpow2.f32 %v768_v59 }
 0x74a   :  { %v2591_v17 = vpop.eup %2590 }
 0x74b   :  { %v770_v60 = vsel %vm118_vm4, %v2591_v17, 0.0 }
 0x74c   :  { %771 = vadd.xlane.f32.xlu0 %v770_v60 }
 0x74e   :  { %v2593_v22 = vpop.eup %2592 }
 0x74f   :  { %v773_v61 = vsel %vm118_vm4, %v2593_v22, 0.0 }
 0x750   :  { %774 = vadd.xlane.f32.xlu1 %v773_v61 }
 0x761   :  { %830 = vrot.lane.b32.xlu1 %v2859_v38, %s2649_s25 }
 0x762   :  { %782 = vrot.lane.b32.xlu0 %v2855_v34, %s2649_s25 }
 0x7d5   :  { %v772_v62 = vpop.xlane.xlu0 %771 }
 0x7d6   :  { %2594 = vrcp.f32 %v772_v62 }
 0x7d9   :  { %v775_v63 = vpop.xlane.xlu1 %774  ;;  %v783_v0 = vpop.permute.xlu0 %782 }
 0x7da   :  { %2596 = vrcp.f32 %v775_v63  ;;  %v788_v1 = vsel %vm564_vm8, %v783_v0, 0  ;;  %v2202_v0 = vld [vmem:[%s3218_s12] ss:$0 sm:$0xff] }
 0x7db   :  { %2400 = vmatpush3.bf16.msra.mxu1 %v788_v1 }
 0x7dc   :  { %2411 = vmatprep.subr.bf16.mxu1 %v2643_v3 }
 0x7dd   :  { %v831_v2 = vpop.permute.xlu1 %830 }
 0x7de   :  { %v836_v4 = vsel %vm564_vm8, %v831_v2, 0 }
 0x7df   :  { %2406 = vmatpush3.bf16.msra.mxu0 %v836_v4 }
 0x7e0   :  { %2419 = vmatprep.subr.bf16.mxu0 %v2643_v3 }
 0x7e3   :  { %v2595_v38 = vpop.eup %2594 }
 0x7e4   :  { %v778_v5 = vmul.f32 %v2595_v38, %v2591_v17 }
 0x7e6   :  { %v780_v6 = vpack.c.bf16 %v778_v5, %v778_v5  ;;  %v2203_v5 = vld [vmem:[%s3219_s13] ss:$0 sm:$0xff] }
 0x7e7   :  { %v2597_v34 = vpop.eup %2596 }
 0x7e8   :  { %2402 = vmatmul.mubr.msk.bf16.vlgmr.msra.gmra.mxu1 %vm118_vm4, %v780_v6  ;;  %v779_v7 = vmul.f32 %v2597_v34, %v2593_v22 }
 0x7e9   :  { %2415 = vmatprep.mubr.msk.bf16.mxu1 %vm2644_vm5, %v2643_v3  ;;  %2412 = vmatpush3.bf16.msra.mxu1 %v2554_v9  ;;  %v2558_v9 = vld [vmem:[%s3220_s16 + $0x18] sm:$0xff]  }
 0x7ea   :  { %v781_v8 = vpack.c.bf16 %v779_v7, %v779_v7  ;;  %2413 = vmatprep.subr.bf16.mxu1 %v2643_v3 }
 0x7ec   :  { %2408 = vmatmul.mubr.msk.bf16.vlgmr.msra.gmra.mxu0 %vm118_vm4, %v781_v8 }
 0x7ed   :  { %2423 = vmatprep.mubr.msk.bf16.mxu0 %vm2644_vm5, %v2643_v3  ;;  %2414 = vmatpush3.bf16.msra.mxu1 %v2555_v10  ;;  %v2559_v10 = vld [vmem:[%s3220_s16 + $0x10] sm:$0xff]  }
 0x7ee   :  { %2427 = vmatprep.subr.bf16.mxu1 %v2643_v3 }
 0x8a8   :  { %v824_v11 = vpop.f32.mrf.mxu1 }
 0x8aa   :  { %v2403_v12 = vpop.f32.mrf.mxu1 }
 0x8ab   :  { %v2561_v12 = vld [vmem:[%s3220_s16] sm:$0xff]  }
 0x8ac   :  { %v827_v13 = vpop.f32.mrf.mxu1  ;;  %v872_v14 = vpop.f32.mrf.mxu0 }
 0x8ad   :  { %v2542_v15 = vpack.i.bf16 %v872_v14, %v824_v11  ;;  %v2560_v11 = vld [vmem:[%s3220_s16 + $0x8] sm:$0xff]   ;;  %v2204_v13 = vld [vmem:[%s3221_s15] ss:$0 sm:$0xff] }
 0x8ae   :  { %v2404_v16 = vpop.f32.mrf.mxu1  ;;  %v2409_v18 = vpop.f32.mrf.mxu0 }
 0x8af   :  { %2543 = vrot.lane.b32.xlu1 %v2542_v15, %s2650_s29 }
 0x8b0   :  { %v875_v19 = vpop.f32.mrf.mxu0 }
 0x8b2   :  { %v2410_v20 = vpop.f32.mrf.mxu0 }
 0x921   :  { %v2544_v21 = vpop.permute.xlu1 %2543 }
 0x922   :  { %v2546_v23 = vunpack.i.h.bf16 %v2544_v21  ;;  %v2545_v24 = vunpack.i.l.bf16 %v2544_v21 }
 0x924   :  { %v887_v25 = vsel %vm439_vm7, %v2917_v33, %v2546_v23  ;;  %v886_v26 = vsel %vm439_vm7, %v2915_v30, %v2545_v24 }
 0x925   :  { %v893_v29 = vpack.c.bf16 %v887_v25, %v886_v26 }
 0x927   :  { %2416 = vmatmul.mubr.msk.bf16.vlgmr.msra.gmra.mxu1 %vm310_vm6, %v893_v29 }
 0x928   :  { %2435 = vmatprep.mubr.msk.bf16.mxu1 %vm2644_vm5, %v2643_v3  ;;  %2428 = vmatpush3.bf16.msra.mxu1 %v2558_v9 }
 0x929   :  { %2429 = vmatprep.subr.bf16.mxu1 %v2643_v3 }
 0x92c   :  { %2430 = vmatpush3.bf16.msra.mxu1 %v2559_v10 }
 0x92d   :  { %2431 = vmatprep.subr.bf16.mxu1 %v2643_v3 }
 0x930   :  { %2432 = vmatpush3.bf16.msra.mxu1 %v2560_v11 }
 0x931   :  { %2433 = vmatprep.subr.bf16.mxu1 %v2643_v3 }
 0x934   :  { %2434 = vmatpush3.bf16.msra.mxu1 %v2561_v12  ;;  %v2214_v12 = vld [vmem:[%s3223_s18] ss:$0 sm:$0xff] }
 0x935   :  { %2453 = vmatprep.subr.bf16.mxu1 %v2643_v3 }
 0x9e7   :  { %v949_v32 = vpop.f32.mrf.mxu1 }
 0x9e8   :  { %v950_v35 = vadd.f32 %v2198_v31, %v949_v32 }
 0x9e9   :  { %v2417_v36 = vpop.f32.mrf.mxu1 }
 0x9ea   :  { %v956_v37 = vadd.f32 %v950_v35, %v2843_v27  ;;  %v2556_v27 = vld [vmem:[%s3217_s14 + $0x8] sm:$0xff]  }
 0x9eb   :  { %v952_v39 = vpop.f32.mrf.mxu1  ;;  %2420 = vmatpush3.bf16.msra.mxu0 %v2556_v27 }
 0x9ec   :  { %v953_v33 = vadd.f32 %v2198_v31, %v952_v39  ;;  %v960_v40 = vsel %vm310_vm6, %v956_v37, 0.0  ;;  %v968_v30 = vmul.f32 %v956_v37, %v956_v37  ;;  %2421 = vmatprep.subr.bf16.mxu0 %v2643_v3 }
 0x9ed   :  { %961 = vadd.xlane.f32.xlu0 %v960_v40  ;;  %v2418_v41 = vpop.f32.mrf.mxu1 }
 0x9ee   :  { %v957_v42 = vadd.f32 %v953_v33, %v2845_v28  ;;  %v970_v43 = vsel %vm310_vm6, %v968_v30, 0.0 }
 0x9ef   :  { %2422 = vmatpush3.bf16.msra.mxu0 %v2557_v47 }
 0x9f0   :  { %v963_v44 = vsel %vm310_vm6, %v957_v42, 0.0  ;;  %v969_v45 = vmul.f32 %v957_v42, %v957_v42  ;;  %2439 = vmatprep.subr.bf16.mxu0 %v2643_v3 }
 0x9f1   :  { %971 = vadd.xlane.f32.xlu0 %v970_v43  ;;  %964 = vadd.xlane.f32.xlu1 %v963_v44 }
 0x9f2   :  { %v973_v46 = vsel %vm310_vm6, %v969_v45, 0.0  ;;  %v2208_v45 = vld [vmem:[%s3222_s17] ss:$0 sm:$0xff] }
 0x9f5   :  { %974 = vadd.xlane.f32.xlu0 %v973_v46 }
 0xa76   :  { %v962_v28 = vpop.xlane.xlu0 %961 }
 0xa77   :  { %v966_v49 = vmul.f32 0.03125, %v962_v28 }
 0xa79   :  { %v978_v53 = vmul.f32 %v966_v49, %v966_v49  ;;  %v982_v61 = vsub.f32 %v956_v37, %v966_v49 }
 0xa7a   :  { %v972_v50 = vpop.xlane.xlu0 %971  ;;  %v965_v52 = vpop.xlane.xlu1 %964 }
 0xa7b   :  { %v976_v54 = vmul.f32 0.03125, %v972_v50  ;;  %v967_v55 = vmul.f32 0.03125, %v965_v52 }
 0xa7d   :  { %v980_v56 = vsub.f32 %v976_v54, %v978_v53  ;;  %v979_v59 = vmul.f32 %v967_v55, %v967_v55  ;;  %v983_v1 = vsub.f32 %v957_v42, %v967_v55 }
 0xa7e   :  { %v975_v57 = vpop.xlane.xlu0 %974 }
 0xa7f   :  { %v984_v58 = vadd.f32 1e-12, %v980_v56  ;;  %v977_v17 = vmul.f32 0.03125, %v975_v57 }
 0xa81   :  { %2598 = vrsqrt.f32 %v984_v58  ;;  %v981_v60 = vsub.f32 %v977_v17, %v979_v59  ;;  %v2562_v17 = vld [vmem:[%s3247_s2 + $0x18] sm:$0xff]  }
 0xa83   :  { %v985_v22 = vadd.f32 1e-12, %v981_v60  ;;  %v2563_v60 = vld [vmem:[%s3247_s2 + $0x10] sm:$0xff]  }
 0xa85   :  { %2600 = vrsqrt.f32 %v985_v22 }
 0xa8e   :  { %v2599_v62 = vpop.eup %2598 }
 0xa8f   :  { %v988_v63 = vmul.f32 %v2599_v62, %v982_v61 }
 0xa91   :  { %v996_v38 = vmul.f32 %v2202_v0, %v988_v63 }
 0xa92   :  { %v2601_v2 = vpop.eup %2600 }
 0xa93   :  { %v989_v4 = vmul.f32 %v2601_v2, %v983_v1  ;;  %v1004_v34 = vadd.f32 %v2203_v5, %v996_v38 }
 0xa95   :  { %v997_v6 = vmul.f32 %v2202_v0, %v989_v4 }
 0xa97   :  { %v1005_v7 = vadd.f32 %v2203_v5, %v997_v6 }
 0xa99   :  { %v1011_v8 = vpack.c.bf16 %v1005_v7, %v1004_v34 }
 0xa9b   :  { %2424 = vmatmul.mubr.msk.bf16.vlgmr.msra.gmra.mxu0 %vm310_vm6, %v1011_v8 }
 0xa9c   :  { %2443 = vmatprep.mubr.msk.bf16.mxu0 %vm2644_vm5, %v2643_v3  ;;  %2440 = vmatpush3.bf16.msra.mxu0 %v2562_v17 }
 0xa9d   :  { %2441 = vmatprep.subr.bf16.mxu0 %v2643_v3 }
 0xaa0   :  { %2442 = vmatpush3.bf16.msra.mxu0 %v2563_v60 }
 0xaa1   :  { %2447 = vmatprep.subr.bf16.mxu0 %v2643_v3 }
 0xb5b   :  { %v1067_v14 = vpop.f32.mrf.mxu0 }
 0xb5c   :  { %v1068_v15 = vadd.f32 %v2204_v13, %v1067_v14 }
 0xb5d   :  { %v2425_v16 = vpop.f32.mrf.mxu0 }
 0xb5e   :  { %v1074_v18 = vmul.f32 %v1068_v15, %v1068_v15 }
 0xb5f   :  { %v1070_v19 = vpop.f32.mrf.mxu0 }
 0xb60   :  { %v1076_v20 = vmul.f32 %v1074_v18, %v1068_v15  ;;  %v1071_v21 = vadd.f32 %v2204_v13, %v1070_v19  ;;  %v2215_v18 = vld [vmem:[%s3224_s19] ss:$0 sm:$0xff] }
 0xb61   :  { %v2426_v23 = vpop.f32.mrf.mxu0 }
 0xb62   :  { %v1078_v24 = vmul.f32 0.044715, %v1076_v20  ;;  %v1075_v25 = vmul.f32 %v1071_v21, %v1071_v21 }
 0xb64   :  { %v1080_v26 = vadd.f32 %v1078_v24, %v1068_v15  ;;  %v1077_v29 = vmul.f32 %v1075_v25, %v1071_v21  ;;  %v2221_v24 = vld [vmem:[%s3214_s9 + $0x1] ss:$0 sm:$0xff] }
 0xb66   :  { %v1082_v31 = vmul.f32 0.7978846, %v1080_v26  ;;  %v1079_v32 = vmul.f32 0.044715, %v1077_v29 }
 0xb68   :  { %2602 = vtanh.f32 %v1082_v31  ;;  %v1081_v35 = vadd.f32 %v1079_v32, %v1071_v21 }
 0xb6a   :  { %v1083_v36 = vmul.f32 0.7978846, %v1081_v35 }
 0xb6c   :  { %2604 = vtanh.f32 %v1083_v36 }
 0xb75   :  { %v2603_v37 = vpop.eup %2602 }
 0xb76   :  { %v1086_v39 = vadd.f32 1.0, %v2603_v37 }
 0xb78   :  { %v1088_v40 = vmul.f32 0.5, %v1086_v39 }
 0xb79   :  { %v2605_v33 = vpop.eup %2604 }
 0xb7a   :  { %v1087_v30 = vadd.f32 1.0, %v2605_v33  ;;  %v1090_v42 = vmul.f32 %v1088_v40, %v1068_v15 }
 0xb7c   :  { %v1089_v41 = vmul.f32 0.5, %v1087_v30 }
 0xb7e   :  { %v1091_v43 = vmul.f32 %v1089_v41, %v1071_v21 }
 0xb80   :  { %v1101_v44 = vpack.c.bf16 %v1091_v43, %v1090_v42 }
 0xb82   :  { %2436 = vmatmul.mubr.msk.bf16.vlgmr.msra.gmra.mxu1 %vm1132_vm9, %v1101_v44 }
 0xb83   :  { %2455 = vmatprep.mubr.msk.bf16.mxu1 %vm2644_vm5, %v2643_v3 }
 0xc42   :  { %v1170_v46 = vpop.f32.mrf.mxu1 }
 0xc43   :  { %v1171_v27 = vadd.f32 %v2208_v45, %v1170_v46 }
 0xc44   :  { %v2437_v47 = vpop.f32.mrf.mxu1 }
 0xc45   :  { %v1177_v28 = vadd.f32 %v1171_v27, %v1004_v34 }
 0xc46   :  { %v1173_v49 = vpop.f32.mrf.mxu1 }
 0xc47   :  { %v1174_v50 = vadd.f32 %v2208_v45, %v1173_v49  ;;  %v1181_v52 = vsel %vm310_vm6, %v1177_v28, 0.0  ;;  %v1189_v53 = vmul.f32 %v1177_v28, %v1177_v28 }
 0xc48   :  { %1182 = vadd.xlane.f32.xlu1 %v1181_v52  ;;  %v2438_v54 = vpop.f32.mrf.mxu1 }
 0xc49   :  { %v1178_v55 = vadd.f32 %v1174_v50, %v1005_v7  ;;  %v1191_v56 = vsel %vm310_vm6, %v1189_v53, 0.0 }
 0xc4b   :  { %v1184_v57 = vsel %vm310_vm6, %v1178_v55, 0.0  ;;  %v1190_v58 = vmul.f32 %v1178_v55, %v1178_v55 }
 0xc4c   :  { %1192 = vadd.xlane.f32.xlu1 %v1191_v56  ;;  %1185 = vadd.xlane.f32.xlu0 %v1184_v57 }
 0xc4d   :  { %v1194_v59 = vsel %vm310_vm6, %v1190_v58, 0.0 }
 0xc50   :  { %1195 = vadd.xlane.f32.xlu0 %v1194_v59 }
 0xcd1   :  { %v1183_v22 = vpop.xlane.xlu1 %1182 }
 0xcd2   :  { %v1187_v61 = vmul.f32 0.03125, %v1183_v22 }
 0xcd4   :  { %v1199_v0 = vmul.f32 %v1187_v61, %v1187_v61  ;;  %v1203_v9 = vsub.f32 %v1177_v28, %v1187_v61 }
 0xcd5   :  { %v1193_v62 = vpop.xlane.xlu1 %1192  ;;  %v1186_v63 = vpop.xlane.xlu0 %1185 }
 0xcd6   :  { %v1197_v1 = vmul.f32 0.03125, %v1193_v62  ;;  %v1188_v2 = vmul.f32 0.03125, %v1186_v63 }
 0xcd8   :  { %v1201_v4 = vsub.f32 %v1197_v1, %v1199_v0  ;;  %v1200_v6 = vmul.f32 %v1188_v2, %v1188_v2  ;;  %v1204_v13 = vsub.f32 %v1178_v55, %v1188_v2 }
 0xcd9   :  { %v1196_v38 = vpop.xlane.xlu0 %1195 }
 0xcda   :  { %v1205_v5 = vadd.f32 1e-12, %v1201_v4  ;;  %v1198_v34 = vmul.f32 0.03125, %v1196_v38 }
 0xcdc   :  { %2606 = vrsqrt.f32 %v1205_v5  ;;  %v1202_v7 = vsub.f32 %v1198_v34, %v1200_v6 }
 0xcde   :  { %v1206_v8 = vadd.f32 1e-12, %v1202_v7 }
 0xce0   :  { %2608 = vrsqrt.f32 %v1206_v8 }
 0xce9   :  { %v2607_v10 = vpop.eup %2606 }
 0xcea   :  { %v1209_v11 = vmul.f32 %v2607_v10, %v1203_v9 }
 0xcec   :  { %v1217_v16 = vmul.f32 %v2214_v12, %v1209_v11 }
 0xced   :  { %v2609_v14 = vpop.eup %2608 }
 0xcee   :  { %v1210_v15 = vmul.f32 %v2609_v14, %v1204_v13  ;;  %v3024_v20 = vadd.f32 %v2215_v18, %v1217_v16 }
 0xcf0   :  { %v1218_v19 = vmul.f32 %v2214_v12, %v1210_v15 }
 0xcf2   :  { %v3026_v21 = vadd.f32 %v2215_v18, %v1218_v19 }
 0xcf4   :  { %v1234_v23 = vpack.c.bf16 %v3026_v21, %v3024_v20 }
 0xcf6   :  { %2444 = vmatmul.mubr.msk.bf16.vlgmr.msra.gmra.mxu0 %vm310_vm6, %v1234_v23 }
 0xcf7   :  { %2449 = vmatprep.mubr.msk.bf16.mxu0 %vm2644_vm5, %v2643_v3 }
 0xdb6   :  { %v1290_v25 = vpop.f32.mrf.mxu0 }
 0xdb7   :  { %v1291_v26 = vadd.f32 %v2221_v24, %v1290_v25 }
 0xdb8   :  { %v2445_v29 = vpop.f32.mrf.mxu0 }
 0xdb9   :  { %v3036_v31 = vpack.c.bf16 %v1291_v26, %v1291_v26  ;;  %v1297_v40 = vmul.f32 0.25, %v1291_v26 }
 0xdba   :  { %v1293_v32 = vpop.f32.mrf.mxu0 }
 0xdbb   :  { %v1294_v35 = vadd.f32 %v2221_v24, %v1293_v32  ;;  %1304 = vrot.lane.b32.xlu1 %v3036_v31, %s2645_s7  ;;  %v1299_v42 = vpack.c.bf16 %v1297_v40, %v1297_v40 }
 0xdbc   :  { %v2446_v36 = vpop.f32.mrf.mxu0 }
 0xdbd   :  { %v3040_v37 = vpack.c.bf16 %v1294_v35, %v1294_v35  ;;  %v1298_v43 = vmul.f32 0.25, %v1294_v35 }
 0xdbf   :  { %1353 = vrot.lane.b32.xlu0 %v3040_v37, %s2645_s7  ;;  %v1300_v44 = vpack.c.bf16 %v1298_v43, %v1298_v43 }
 0xe2d   :  { %v1305_v39 = vpop.permute.xlu1 %1304 }
 0xe2e   :  { %v1310_v33 = vsel %vm439_vm7, %v1305_v39, 0 }
 0xe2f   :  { %2448 = vmatpush3.bf16.xpose.msra.mxu0 %v1310_v33 }
 0xe30   :  { %2459 = vmatprep.subr.bf16.mxu0 %v2643_v3 }
 0xe31   :  { %v1354_v30 = vpop.permute.xlu0 %1353 }
 0xe32   :  { %v1359_v41 = vsel %vm439_vm7, %v1354_v30, 0 }
 0xe33   :  { %2454 = vmatpush3.bf16.xpose.msra.mxu1 %v1359_v41 }
 0xe34   :  { %2465 = vmatprep.subr.bf16.mxu1 %v2643_v3 }
 0xe36   :  { %2450 = vmatmul.mubr.msk.bf16.vlgmr.msra.gmra.mxu0 %vm439_vm7, %v1299_v42 }
 0xe37   :  { %2461 = vmatprep.mubr.msk.bf16.mxu0 %vm2644_vm5, %v2643_v3 }
 0xe3a   :  { %2456 = vmatmul.mubr.msk.bf16.vlgmr.msra.gmra.mxu1 %vm439_vm7, %v1300_v44 }
 0xe3b   :  { %2467 = vmatprep.mubr.msk.bf16.mxu1 %vm2644_vm5, %v2643_v3 }
 0xef6   :  { %v1346_v45 = vpop.f32.mrf.mxu0 }
 0xef7   :  { %v1347_v46 = vadd.f32 %v1346_v45, %v2874_v48 }
 0xef8   :  { %v2451_v27 = vpop.f32.mrf.mxu0 }
 0xef9   :  { %v1401_v47 = vsel %vm118_vm4, %v1347_v46, -inf }
 0xefa   :  { %v1395_v28 = vpop.f32.mrf.mxu1  ;;  %1402 = vmax.xlane.f32.xlu1 %v1401_v47  ;;  %v1349_v49 = vpop.f32.mrf.mxu0 }
 0xefb   :  { %v1396_v50 = vadd.f32 %v1395_v28, %v2877_v51 }
 0xefc   :  { %v2452_v52 = vpop.f32.mrf.mxu0  ;;  %v2457_v53 = vpop.f32.mrf.mxu1 }
 0xefd   :  { %v1404_v54 = vsel %vm118_vm4, %v1396_v50, -inf }
 0xefe   :  { %1405 = vmax.xlane.f32.xlu0 %v1404_v54  ;;  %v1398_v55 = vpop.f32.mrf.mxu1 }
 0xf00   :  { %v2458_v56 = vpop.f32.mrf.mxu1 }
 0xf0b   :  { %1425 = vrot.lane.b32.xlu1 %v3036_v31, %s2646_s5 }
 0xf83   :  { %v1403_v57 = vpop.xlane.xlu1 %1402 }
 0xf84   :  { %v1407_v58 = vsub.f32 %v1347_v46, %v1403_v57 }
 0xf86   :  { %v1409_v59 = vmul.f32 1.442695, %v1407_v58 }
 0xf87   :  { %v1406_v17 = vpop.xlane.xlu0 %1405  ;;  %v1426_v60 = vpop.permute.xlu1 %1425 }
 0xf88   :  { %2610 = vpow2.f32 %v1409_v59  ;;  %v1408_v22 = vsub.f32 %v1396_v50, %v1406_v17  ;;  %v1431_v61 = vsel %vm564_vm8, %v1426_v60, 0 }
 0xf89   :  { %2460 = vmatpush3.bf16.msra.mxu0 %v1431_v61 }
 0xf8a   :  { %v1411_v62 = vmul.f32 1.442695, %v1408_v22  ;;  %2471 = vmatprep.subr.bf16.mxu0 %v2643_v3 }
 0xf8c   :  { %2612 = vpow2.f32 %v1411_v62 }
 0xf95   :  { %v2611_v63 = vpop.eup %2610 }
 0xf96   :  { %v1413_v0 = vsel %vm118_vm4, %v2611_v63, 0.0 }
 0xf97   :  { %1414 = vadd.xlane.f32.xlu1 %v1413_v0  ;;  %v2564_v0 = vld [vmem:[%s3215_s10 + $0x18] sm:$0xff]  }
 0xf99   :  { %v2613_v1 = vpop.eup %2612 }
 0xf9a   :  { %v1416_v2 = vsel %vm118_vm4, %v2613_v1, 0.0 }
 0xf9b   :  { %1417 = vadd.xlane.f32.xlu0 %v1416_v2 }
 0xfa8   :  { %1524 = vrot.lane.b32.xlu1 %v3036_v31, %s2647_s24 }
 0xfac   :  { %1575 = vrot.lane.b32.xlu1 %v3040_v37, %s2647_s24 }
 0xfb0   :  { %1573 = vrot.lane.b32.xlu1 %v1300_v44, %s2648_s8 }
 0xfb1   :  { %1473 = vrot.lane.b32.xlu0 %v3040_v37, %s2646_s5 }
 0xfb5   :  { %1522 = vrot.lane.b32.xlu0 %v1299_v42, %s2648_s8 }
0x1020   :  { %v1415_v4 = vpop.xlane.xlu1 %1414 }
0x1021   :  { %2614 = vrcp.f32 %v1415_v4 }
0x1024   :  { %v1418_v38 = vpop.xlane.xlu0 %1417  ;;  %v1525_v7 = vpop.permute.xlu1 %1524 }
0x1025   :  { %2616 = vrcp.f32 %v1418_v38  ;;  %v1530_v11 = vsel %vm439_vm7, %v1525_v7, 0 }
0x1028   :  { %v1474_v5 = vpop.permute.xlu0 %1473  ;;  %v1576_v13 = vpop.permute.xlu1 %1575 }
0x1029   :  { %v1479_v6 = vsel %vm564_vm8, %v1474_v5, 0  ;;  %v1581_v15 = vsel %vm439_vm7, %v1576_v13, 0 }
0x102a   :  { %2466 = vmatpush3.bf16.msra.mxu1 %v1479_v6 }
0x102b   :  { %2477 = vmatprep.subr.bf16.mxu1 %v2643_v3 }
0x102c   :  { %v1523_v16 = vpop.permute.xlu0 %1522  ;;  %v1574_v18 = vpop.permute.xlu1 %1573 }
0x102e   :  { %v2615_v34 = vpop.eup %2614 }
0x102f   :  { %v1421_v8 = vmul.f32 %v2615_v34, %v2611_v63 }
0x1031   :  { %v1423_v9 = vpack.c.bf16 %v1421_v8, %v1421_v8 }
0x1032   :  { %v2617_v10 = vpop.eup %2616 }
0x1033   :  { %2462 = vmatmul.mubr.msk.bf16.vlgmr.msra.gmra.mxu0 %vm118_vm4, %v1423_v9  ;;  %v1422_v12 = vmul.f32 %v2617_v10, %v2613_v1  ;;  %v2565_v1 = vld [vmem:[%s3215_s10 + $0x10] sm:$0xff]  }
0x1034   :  { %2472 = vmatpush3.bf16.xpose.msra.mxu0 %v1530_v11  ;;  %2473 = vmatprep.mubr.msk.bf16.mxu0 %vm2644_vm5, %v2643_v3 }
0x1035   :  { %v1424_v14 = vpack.c.bf16 %v1422_v12, %v1422_v12  ;;  %2483 = vmatprep.subr.bf16.mxu0 %v2643_v3 }
0x1037   :  { %2468 = vmatmul.mubr.msk.bf16.vlgmr.msra.gmra.mxu1 %vm118_vm4, %v1424_v14 }
0x1038   :  { %2478 = vmatpush3.bf16.xpose.msra.mxu1 %v1581_v15  ;;  %2479 = vmatprep.mubr.msk.bf16.mxu1 %vm2644_vm5, %v2643_v3 }
0x1039   :  { %2489 = vmatprep.subr.bf16.mxu1 %v2643_v3 }
0x103b   :  { %2474 = vmatmul.mubr.msk.bf16.vlgmr.msra.gmra.mxu0 %vm439_vm7, %v1523_v16  ;;  %v2238_v16 = vld [vmem:[%s3216_s11 + $0x1] ss:$0 sm:$0xff] }
0x103c   :  { %2485 = vmatprep.mubr.msk.bf16.mxu0 %vm2644_vm5, %v2643_v3 }
0x103f   :  { %2480 = vmatmul.mubr.msk.bf16.vlgmr.msra.gmra.mxu1 %vm439_vm7, %v1574_v18 }
0x1040   :  { %2491 = vmatprep.mubr.msk.bf16.mxu1 %vm2644_vm5, %v2643_v3 }
0x10f3   :  { %v3090_v19 = vpop.f32.mrf.mxu0 }
0x10f5   :  { %v2463_v23 = vpop.f32.mrf.mxu0 }
0x10f7   :  { %v1470_v24 = vpop.f32.mrf.mxu0  ;;  %v3092_v25 = vpop.f32.mrf.mxu1 }
0x10f9   :  { %v2464_v26 = vpop.f32.mrf.mxu0  ;;  %v2469_v29 = vpop.f32.mrf.mxu1 }
0x10fb   :  { %v1518_v32 = vpop.f32.mrf.mxu1  ;;  %v1566_v35 = vpop.f32.mrf.mxu0 }
0x10fc   :  { %v1567_v36 = vadd.f32 %v1566_v35, %v2874_v48 }
0x10fd   :  { %v2470_v39 = vpop.f32.mrf.mxu1  ;;  %v2475_v33 = vpop.f32.mrf.mxu0 }
0x10fe   :  { %v1623_v40 = vsel %vm118_vm4, %v1567_v36, -inf }
0x10ff   :  { %v1617_v30 = vpop.f32.mrf.mxu1  ;;  %1624 = vmax.xlane.f32.xlu0 %v1623_v40  ;;  %v1569_v41 = vpop.f32.mrf.mxu0 }
0x1100   :  { %v1618_v42 = vadd.f32 %v1617_v30, %v2877_v51 }
0x1101   :  { %v2476_v43 = vpop.f32.mrf.mxu0  ;;  %v2481_v44 = vpop.f32.mrf.mxu1 }
0x1102   :  { %v1626_v45 = vsel %vm118_vm4, %v1618_v42, -inf }
0x1103   :  { %1627 = vmax.xlane.f32.xlu1 %v1626_v45  ;;  %v1620_v46 = vpop.f32.mrf.mxu1 }
0x1105   :  { %v2482_v27 = vpop.f32.mrf.mxu1 }
0x1114   :  { %1647 = vrot.lane.b32.xlu1 %v3036_v31, %s2649_s25 }
0x1188   :  { %v1625_v48 = vpop.xlane.xlu0 %1624 }
0x1189   :  { %v1629_v47 = vsub.f32 %v1567_v36, %v1625_v48 }
0x118b   :  { %v1631_v28 = vmul.f32 1.442695, %v1629_v47 }
0x118c   :  { %v1628_v49 = vpop.xlane.xlu1 %1627 }
0x118d   :  { %2618 = vpow2.f32 %v1631_v28  ;;  %v1630_v50 = vsub.f32 %v1618_v42, %v1628_v49 }
0x118f   :  { %v1633_v52 = vmul.f32 1.442695, %v1630_v50 }
0x1190   :  { %v1648_v53 = vpop.permute.xlu1 %1647 }
0x1191   :  { %2620 = vpow2.f32 %v1633_v52  ;;  %v1653_v51 = vsel %vm564_vm8, %v1648_v53, 0 }
0x1192   :  { %2484 = vmatpush3.bf16.msra.mxu0 %v1653_v51 }
0x1193   :  { %2495 = vmatprep.subr.bf16.mxu0 %v2643_v3 }
0x119a   :  { %v2619_v54 = vpop.eup %2618 }
0x119b   :  { %v1635_v55 = vsel %vm118_vm4, %v2619_v54, 0.0 }
0x119c   :  { %1636 = vadd.xlane.f32.xlu0 %v1635_v55  ;;  %v2244_v55 = vld [vmem:[%s3218_s12 + $0x1] ss:$0 sm:$0xff] }
0x119e   :  { %v2621_v56 = vpop.eup %2620 }
0x119f   :  { %v1638_v31 = vsel %vm118_vm4, %v2621_v56, 0.0 }
0x11a0   :  { %1639 = vadd.xlane.f32.xlu0 %v1638_v31 }
0x11b6   :  { %1695 = vrot.lane.b32.xlu0 %v3040_v37, %s2649_s25 }
0x1225   :  { %v1637_v57 = vpop.xlane.xlu0 %1636 }
0x1226   :  { %2622 = vrcp.f32 %v1637_v57 }
0x1229   :  { %v1640_v58 = vpop.xlane.xlu0 %1639 }
0x122a   :  { %2624 = vrcp.f32 %v1640_v58 }
0x122d   :  { %v1696_v59 = vpop.permute.xlu0 %1695 }
0x122e   :  { %v1701_v17 = vsel %vm564_vm8, %v1696_v59, 0 }
0x122f   :  { %2490 = vmatpush3.bf16.msra.mxu1 %v1701_v17  ;;  %v2245_v17 = vld [vmem:[%s3219_s13 + $0x1] ss:$0 sm:$0xff] }
0x1230   :  { %2503 = vmatprep.subr.bf16.mxu1 %v2643_v3 }
0x1233   :  { %v2623_v60 = vpop.eup %2622 }
0x1234   :  { %v1643_v22 = vmul.f32 %v2623_v60, %v2619_v54 }
0x1236   :  { %v1645_v61 = vpack.c.bf16 %v1643_v22, %v1643_v22 }
0x1237   :  { %v2625_v62 = vpop.eup %2624 }
0x1238   :  { %2486 = vmatmul.mubr.msk.bf16.vlgmr.msra.gmra.mxu0 %vm118_vm4, %v1645_v61  ;;  %v1644_v63 = vmul.f32 %v2625_v62, %v2621_v56 }
0x1239   :  { %2499 = vmatprep.mubr.msk.bf16.mxu0 %vm2644_vm5, %v2643_v3  ;;  %2496 = vmatpush3.bf16.msra.mxu0 %v2564_v0  ;;  %v2570_v0 = vld [vmem:[%s3220_s16 + $0x28] sm:$0xff]  }
0x123a   :  { %v1646_v37 = vpack.c.bf16 %v1644_v63, %v1644_v63  ;;  %2497 = vmatprep.subr.bf16.mxu0 %v2643_v3  ;;  %v2568_v63 = vld [vmem:[%s3220_s16 + $0x38] sm:$0xff]  }
0x123c   :  { %2492 = vmatmul.mubr.msk.bf16.vlgmr.msra.gmra.mxu1 %vm118_vm4, %v1646_v37  ;;  %v2569_v37 = vld [vmem:[%s3220_s16 + $0x30] sm:$0xff]  }
0x123d   :  { %2507 = vmatprep.mubr.msk.bf16.mxu1 %vm2644_vm5, %v2643_v3  ;;  %2498 = vmatpush3.bf16.msra.mxu0 %v2565_v1  ;;  %v2571_v1 = vld [vmem:[%s3220_s16 + $0x20] sm:$0xff]  }
0x123e   :  { %2511 = vmatprep.subr.bf16.mxu0 %v2643_v3 }
0x12f8   :  { %v1689_v2 = vpop.f32.mrf.mxu0 }
0x12fa   :  { %v2487_v4 = vpop.f32.mrf.mxu0 }
0x12fc   :  { %v1692_v38 = vpop.f32.mrf.mxu0  ;;  %v1737_v5 = vpop.f32.mrf.mxu1 }
0x12fd   :  { %v2547_v6 = vpack.i.bf16 %v1737_v5, %v1689_v2  ;;  %v2251_v2 = vld [vmem:[%s3221_s15 + $0x1] ss:$0 sm:$0xff] }
0x12fe   :  { %v2488_v34 = vpop.f32.mrf.mxu0  ;;  %v2493_v7 = vpop.f32.mrf.mxu1 }
0x12ff   :  { %2548 = vrot.lane.b32.xlu1 %v2547_v6, %s2650_s29 }
0x1300   :  { %v1740_v8 = vpop.f32.mrf.mxu1 }
0x1302   :  { %v2494_v9 = vpop.f32.mrf.mxu1 }
0x1371   :  { %v2549_v10 = vpop.permute.xlu1 %2548 }
0x1372   :  { %v2551_v11 = vunpack.i.h.bf16 %v2549_v10  ;;  %v2550_v12 = vunpack.i.l.bf16 %v2549_v10 }
0x1374   :  { %v1752_v13 = vsel %vm439_vm7, %v3092_v25, %v2551_v11  ;;  %v1751_v14 = vsel %vm439_vm7, %v3090_v19, %v2550_v12 }
0x1375   :  { %v1760_v15 = vpack.c.bf16 %v1752_v13, %v1751_v14 }
0x1377   :  { %2500 = vmatmul.mubr.msk.bf16.vlgmr.msra.gmra.mxu0 %vm310_vm6, %v1760_v15 }
0x1378   :  { %2519 = vmatprep.mubr.msk.bf16.mxu0 %vm2644_vm5, %v2643_v3  ;;  %2512 = vmatpush3.bf16.msra.mxu0 %v2568_v63  ;;  %v2272_v63 = vld [vmem:[%s3223_s18 + $0x1] ss:$0 sm:$0xff] }
0x1379   :  { %2513 = vmatprep.subr.bf16.mxu0 %v2643_v3 }
0x137c   :  { %2514 = vmatpush3.bf16.msra.mxu0 %v2569_v37 }
0x137d   :  { %2515 = vmatprep.subr.bf16.mxu0 %v2643_v3 }
0x1380   :  { %2516 = vmatpush3.bf16.msra.mxu0 %v2570_v0 }
0x1381   :  { %2517 = vmatprep.subr.bf16.mxu0 %v2643_v3 }
0x1384   :  { %2518 = vmatpush3.bf16.msra.mxu0 %v2571_v1 }
0x1437   :  { %v1816_v18 = vpop.f32.mrf.mxu0 }
0x1438   :  { %v1817_v23 = vadd.f32 %v2238_v16, %v1816_v18 }
0x1439   :  { %v2501_v24 = vpop.f32.mrf.mxu0 }
0x143a   :  { %v1823_v26 = vadd.f32 %v1817_v23, %v3024_v20  ;;  %v2566_v20 = vld [vmem:[%s3217_s14 + $0x18] sm:$0xff]  }
0x143b   :  { %v1819_v29 = vpop.f32.mrf.mxu0  ;;  %2504 = vmatpush3.bf16.msra.mxu1 %v2566_v20 }
0x143c   :  { %v1820_v25 = vadd.f32 %v2238_v16, %v1819_v29  ;;  %v1829_v32 = vsel %vm310_vm6, %v1823_v26, 0.0  ;;  %v1837_v33 = vmul.f32 %v1823_v26, %v1823_v26  ;;  %2505 = vmatprep.subr.bf16.mxu1 %v2643_v3 }
0x143d   :  { %1830 = vadd.xlane.f32.xlu1 %v1829_v32  ;;  %v2502_v19 = vpop.f32.mrf.mxu0 }
0x143e   :  { %v1824_v35 = vadd.f32 %v1820_v25, %v3026_v21  ;;  %v1839_v30 = vsel %vm310_vm6, %v1837_v33, 0.0  ;;  %v2567_v21 = vld [vmem:[%s3217_s14 + $0x10] sm:$0xff]  }
0x143f   :  { %2506 = vmatpush3.bf16.msra.mxu1 %v2567_v21 }
0x1440   :  { %v1832_v36 = vsel %vm310_vm6, %v1824_v35, 0.0  ;;  %v1838_v39 = vmul.f32 %v1824_v35, %v1824_v35  ;;  %2523 = vmatprep.subr.bf16.mxu1 %v2643_v3 }
0x1441   :  { %1833 = vadd.xlane.f32.xlu0 %v1832_v36 }
0x1442   :  { %v1842_v40 = vsel %vm310_vm6, %v1838_v39, 0.0  ;;  %v2264_v39 = vld [vmem:[%s3222_s17 + $0x1] ss:$0 sm:$0xff] }
0x1443   :  { %1843 = vadd.xlane.f32.xlu1 %v1842_v40 }
0x1445   :  { %1840 = vadd.xlane.f32.xlu0 %v1839_v30 }
0x14c6   :  { %v1831_v41 = vpop.xlane.xlu1 %1830 }
0x14c7   :  { %v1835_v43 = vmul.f32 0.03125, %v1831_v41 }
0x14c9   :  { %v1847_v47 = vmul.f32 %v1835_v43, %v1835_v43  ;;  %v1851_v56 = vsub.f32 %v1823_v26, %v1835_v43 }
0x14ca   :  { %v1834_v42 = vpop.xlane.xlu0 %1833 }
0x14cb   :  { %v1836_v44 = vmul.f32 0.03125, %v1834_v42 }
0x14cc   :  { %v1844_v45 = vpop.xlane.xlu1 %1843 }
0x14cd   :  { %v1848_v46 = vmul.f32 %v1836_v44, %v1836_v44  ;;  %v1846_v27 = vmul.f32 0.03125, %v1844_v45  ;;  %v1852_v51 = vsub.f32 %v1824_v35, %v1836_v44 }
0x14ce   :  { %v1841_v48 = vpop.xlane.xlu0 %1840 }
0x14cf   :  { %v1850_v28 = vsub.f32 %v1846_v27, %v1848_v46  ;;  %v1845_v49 = vmul.f32 0.03125, %v1841_v48 }
0x14d1   :  { %v1854_v50 = vadd.f32 1e-12, %v1850_v28  ;;  %v1849_v52 = vsub.f32 %v1845_v49, %v1847_v47  ;;  %v2572_v28 = vld [vmem:[%s3225_s20 + $0x8] sm:$0xff]   ;;  %v2573_v49 = vld [vmem:[%s3225_s20] sm:$0xff]  }
0x14d3   :  { %2626 = vrsqrt.f32 %v1854_v50  ;;  %v1853_v53 = vadd.f32 1e-12, %v1849_v52 }
0x14d5   :  { %2628 = vrsqrt.f32 %v1853_v53 }
0x14e0   :  { %v2627_v54 = vpop.eup %2626 }
0x14e1   :  { %v1858_v31 = vmul.f32 %v2627_v54, %v1852_v51 }
0x14e2   :  { %v2629_v57 = vpop.eup %2628 }
0x14e3   :  { %v1857_v58 = vmul.f32 %v2629_v57, %v1851_v56  ;;  %v1866_v59 = vmul.f32 %v2244_v55, %v1858_v31 }
0x14e5   :  { %v1865_v60 = vmul.f32 %v2244_v55, %v1857_v58  ;;  %v1874_v61 = vadd.f32 %v2245_v17, %v1866_v59 }
0x14e7   :  { %v1873_v22 = vadd.f32 %v2245_v17, %v1865_v60 }
0x14e9   :  { %v1882_v62 = vpack.c.bf16 %v1874_v61, %v1873_v22 }
0x14eb   :  { %2508 = vmatmul.mubr.msk.bf16.vlgmr.msra.gmra.mxu1 %vm310_vm6, %v1882_v62 }
0x14ec   :  { %2527 = vmatprep.mubr.msk.bf16.mxu1 %vm2644_vm5, %v2643_v3  ;;  %2524 = vmatpush3.bf16.msra.mxu1 %v2572_v28 }
0x14ed   :  { %2525 = vmatprep.subr.bf16.mxu1 %v2643_v3 }
0x14f0   :  { %2526 = vmatpush3.bf16.msra.mxu1 %v2573_v49 }
0x15ab   :  { %v1938_v4 = vpop.f32.mrf.mxu1 }
0x15ac   :  { %v1939_v38 = vadd.f32 %v2251_v2, %v1938_v4  ;;  %v2273_v4 = vld [vmem:[%s3224_s19 + $0x1] ss:$0 sm:$0xff] }
0x15ad   :  { %v2509_v5 = vpop.f32.mrf.mxu1 }
0x15ae   :  { %v1945_v6 = vmul.f32 %v1939_v38, %v1939_v38 }
0x15af   :  { %v1941_v34 = vpop.f32.mrf.mxu1 }
0x15b0   :  { %v1947_v7 = vmul.f32 %v1945_v6, %v1939_v38  ;;  %v1942_v8 = vadd.f32 %v2251_v2, %v1941_v34 }
0x15b1   :  { %v2510_v9 = vpop.f32.mrf.mxu1 }
0x15b2   :  { %v1949_v10 = vmul.f32 0.044715, %v1947_v7  ;;  %v1946_v11 = vmul.f32 %v1942_v8, %v1942_v8  ;;  %v2274_v7 = vld [vmem:[%s3226_s21] ss:$0 sm:$0xff] }
0x15b4   :  { %v1951_v12 = vadd.f32 %v1949_v10, %v1939_v38  ;;  %v1948_v13 = vmul.f32 %v1946_v11, %v1942_v8 }
0x15b6   :  { %v1953_v14 = vmul.f32 0.7978846, %v1951_v12  ;;  %v1950_v15 = vmul.f32 0.044715, %v1948_v13 }
0x15b8   :  { %2630 = vtanh.f32 %v1953_v14  ;;  %v1952_v16 = vadd.f32 %v1950_v15, %v1942_v8 }
0x15ba   :  { %v1954_v18 = vmul.f32 0.7978846, %v1952_v16 }
0x15bc   :  { %2632 = vtanh.f32 %v1954_v18 }
0x15c5   :  { %v2631_v23 = vpop.eup %2630 }
0x15c6   :  { %v1957_v24 = vadd.f32 1.0, %v2631_v23 }
0x15c8   :  { %v1959_v29 = vmul.f32 0.5, %v1957_v24 }
0x15c9   :  { %v2633_v26 = vpop.eup %2632 }
0x15ca   :  { %v1958_v25 = vadd.f32 1.0, %v2633_v26  ;;  %v1961_v19 = vmul.f32 %v1959_v29, %v1939_v38 }
0x15cc   :  { %v1960_v32 = vmul.f32 0.5, %v1958_v25 }
0x15ce   :  { %v1962_v35 = vmul.f32 %v1960_v32, %v1942_v8 }
0x15d0   :  { %v1974_v36 = vpack.c.bf16 %v1962_v35, %v1961_v19 }
0x15d2   :  { %2520 = vmatmul.mubr.msk.bf16.vlgmr.msra.gmra.mxu0 %vm1132_vm9, %v1974_v36 }
0x1692   :  { %v2042_v33 = vpop.f32.mrf.mxu0 }
0x1693   :  { %v2043_v40 = vadd.f32 %v2264_v39, %v2042_v33 }
0x1694   :  { %v2521_v30 = vpop.f32.mrf.mxu0 }
0x1695   :  { %v2049_v20 = vadd.f32 %v2043_v40, %v1873_v22 }
0x1696   :  { %v2045_v21 = vpop.f32.mrf.mxu0 }
0x1697   :  { %v2046_v41 = vadd.f32 %v2264_v39, %v2045_v21  ;;  %v2055_v42 = vsel %vm310_vm6, %v2049_v20, 0.0  ;;  %v2063_v43 = vmul.f32 %v2049_v20, %v2049_v20 }
0x1698   :  { %2056 = vadd.xlane.f32.xlu0 %v2055_v42  ;;  %v2522_v44 = vpop.f32.mrf.mxu0 }
0x1699   :  { %v2050_v45 = vadd.f32 %v2046_v41, %v1874_v61  ;;  %v2065_v46 = vsel %vm310_vm6, %v2063_v43, 0.0 }
0x169b   :  { %v2058_v27 = vsel %vm310_vm6, %v2050_v45, 0.0  ;;  %v2064_v48 = vmul.f32 %v2050_v45, %v2050_v45 }
0x169c   :  { %2066 = vadd.xlane.f32.xlu0 %v2065_v46  ;;  %2059 = vadd.xlane.f32.xlu1 %v2058_v27 }
0x169d   :  { %v2068_v47 = vsel %vm310_vm6, %v2064_v48, 0.0 }
0x16a0   :  { %2069 = vadd.xlane.f32.xlu1 %v2068_v47 }
0x1721   :  { %v2057_v50 = vpop.xlane.xlu0 %2056 }
0x1722   :  { %v2061_v52 = vmul.f32 0.03125, %v2057_v50 }
0x1724   :  { %v2073_v54 = vmul.f32 %v2061_v52, %v2061_v52  ;;  %v2077_v61 = vsub.f32 %v2049_v20, %v2061_v52 }
0x1725   :  { %v2067_v53 = vpop.xlane.xlu0 %2066  ;;  %v2060_v51 = vpop.xlane.xlu1 %2059 }
0x1726   :  { %v2071_v55 = vmul.f32 0.03125, %v2067_v53  ;;  %v2062_v56 = vmul.f32 0.03125, %v2060_v51 }
0x1728   :  { %v2075_v31 = vsub.f32 %v2071_v55, %v2073_v54  ;;  %v2074_v59 = vmul.f32 %v2062_v56, %v2062_v56  ;;  %v2078_v37 = vsub.f32 %v2050_v45, %v2062_v56 }
0x1729   :  { %v2070_v57 = vpop.xlane.xlu1 %2069 }
0x172a   :  { %v2079_v58 = vadd.f32 1e-12, %v2075_v31  ;;  %v2072_v17 = vmul.f32 0.03125, %v2070_v57 }
0x172c   :  { %2634 = vrsqrt.f32 %v2079_v58  ;;  %v2076_v60 = vsub.f32 %v2072_v17, %v2074_v59 }
0x172e   :  { %v2080_v22 = vadd.f32 1e-12, %v2076_v60 }
0x1730   :  { %2636 = vrsqrt.f32 %v2080_v22 }
0x1739   :  { %v2635_v62 = vpop.eup %2634 }
0x173a   :  { %v2083_v3 = vmul.f32 %v2635_v62, %v2077_v61 }
0x173c   :  { %v2091_v2 = vmul.f32 %v2272_v63, %v2083_v3 }
0x173d   :  { %v2637_v0 = vpop.eup %2636 }
0x173e   :  { %v2084_v1 = vmul.f32 %v2637_v0, %v2078_v37  ;;  %v2099_v5 = vadd.f32 %v2273_v4, %v2091_v2 }
0x1740   :  { %v2092_v38 = vmul.f32 %v2272_v63, %v2084_v1 }
0x1742   :  { %v2100_v6 = vadd.f32 %v2273_v4, %v2092_v38 }
0x1744   :  { %v2106_v34 = vpack.c.bf16 %v2100_v6, %v2099_v5 }
0x1746   :  { %2528 = vmatmul.mubr.msk.bf16.vlgmr.msra.gmra.mxu1 %vm310_vm6, %v2106_v34 }
0x1806   :  { %v2162_v8 = vpop.f32.mrf.mxu1 }
0x1807   :  { %v2163_v9 = vadd.f32 %v2274_v7, %v2162_v8 }
0x1808   :  { %v2529_v10 = vpop.f32.mrf.mxu1 }
0x1809   :  { %2638 = vtanh.f32 %v2163_v9 }
0x180a   :  { %v2165_v11 = vpop.f32.mrf.mxu1 }
0x180b   :  { %v2166_v12 = vadd.f32 %v2274_v7, %v2165_v11 }
0x180c   :  { %v2530_v13 = vpop.f32.mrf.mxu1 }
0x180d   :  { %2640 = vtanh.f32 %v2166_v12 }
0x1816   :  { %v2639_v14 = vpop.eup %2638 }
0x1817   :  { %2171 = vst [vmem:[%s3227_s22] sm:$0xff] %v2639_v14 }
0x181a   :  { %v2641_v15 = vpop.eup %2640 }
0x181b   :  { %2172 = vst [vmem:[%s3227_s22 + $0x8] sm:$0xff] %v2641_v15 }

</bundles_post_ra>
